<compile_context>
chip_gen: v6e
topology: v6e:2x2x1
jax: 0.10.0
libtpu: 0.0.40
codegen_flags: <defaults>
</compile_context>

<pallas_src>
import math

import numpy as np
import jax
import jax.numpy as jnp
from jax import lax
from jax.experimental import pallas as pl
from jax.experimental.pallas import tpu as pltpu

# ---------------- configuration (mirrors YOLOLoss.__init__) ----------------
ANCHORS = [(10., 13.), (16., 30.), (33., 23.),
           (30., 61.), (62., 45.), (59., 119.),
           (116., 90.), (156., 198.), (373., 326.)]
NUM_ANCHORS = len(ANCHORS)              # 9
N_ANCH_SCALE = NUM_ANCHORS // 3         # 3 anchors at this feature scale
NUM_CLASSES = 3
BBOX_ATTRS = 5 + NUM_CLASSES            # 8
IMG_SIZE = (128, 128)
FEATURE_LENGTH = [IMG_SIZE[0] // 32, IMG_SIZE[0] // 16, IMG_SIZE[0] // 8]
IGNORE_THRESH = 0.5
LAMBDA_XY = 1.0
LAMBDA_WH = 1.0
LAMBDA_CONF = 1.0
LAMBDA_CLS = 1.0

BS = 2                 # batch size
IN_H = IN_W = 16       # feature map size (matches FEATURE_LENGTH[-1])
BA = BS * N_ANCH_SCALE                  # 6
BA_PAD = 8                              # pad to a full (8, 128)-sublane tile
HW = IN_H * IN_W                        # 256
MAX_GT = 4                              # fixed -> no per-call recompiles
_EPS = 1e-7

# per-scale scaled anchors (module constants)
_IDX = FEATURE_LENGTH.index(IN_W)
_ANCHOR_INDEX = [[0, 1, 2], [3, 4, 5], [6, 7, 8]][_IDX]
_STRIDE_W = IMG_SIZE[0] / IN_W
_STRIDE_H = IMG_SIZE[1] / IN_H
_SCALED_ANCHORS = np.array([(aw / _STRIDE_W, ah / _STRIDE_H) for aw, ah in ANCHORS],
                           np.float32)
_SC_AW = _SCALED_ANCHORS[_ANCHOR_INDEX, 0]
_SC_AH = _SCALED_ANCHORS[_ANCHOR_INDEX, 1]

# constant aux planes (grid / anchors) -- become compile-time constants in jit
_grid_x = np.tile(np.arange(IN_W, dtype=np.float32), IN_H)          # (HW,)
_grid_y = np.repeat(np.arange(IN_H, dtype=np.float32), IN_W)        # (HW,)
_aw_rows = np.array([_SC_AW[i % N_ANCH_SCALE] for i in range(BA_PAD)], np.float32)
_ah_rows = np.array([_SC_AH[i % N_ANCH_SCALE] for i in range(BA_PAD)], np.float32)
_CONST_PLANES = np.stack([
    np.broadcast_to(_grid_x[None, :], (BA_PAD, HW)),
    np.broadcast_to(_grid_y[None, :], (BA_PAD, HW)),
    np.broadcast_to(_aw_rows[:, None], (BA_PAD, HW)),
    np.broadcast_to(_ah_rows[:, None], (BA_PAD, HW)),
]).astype(np.float32)                                                # (4, 8, 256)

# aux-plane indices inside the single stacked (N_AUX, BA_PAD, HW) operand
A_TX, A_TY, A_TW, A_TH = 0, 1, 2, 3
A_MASK, A_NOOBJ = 4, 5
A_WXY, A_WWH = 6, 7            # fused bce / mse per-element weights
A_TCLS0 = 8                    # 8, 9, 10  (one plane per class)
A_GX, A_GY, A_AW, A_AH = 11, 12, 13, 14
N_AUX = 15


# ----------------------------- Pallas kernel --------------------------------
def _bce_from_exp(z, e_neg_abs_z, t):
    # BCE(sigmoid(z), t) in logits form, reusing a precomputed exp(-|z|).
    # (log1p avoided on purpose; 1+e is in (1,2] so plain log is exact enough.)
    return jnp.maximum(z, 0.0) - z * t + jnp.log(1.0 + e_neg_abs_z)


def _bce_logits(z, t):
    return _bce_from_exp(z, jnp.exp(-jnp.abs(z)), t)


def _yolo_loss_kernel(pred_ref, aux_ref, gt_ref, out_ref):
    # pred_ref: (BBOX_ATTRS, BA_PAD, HW) raw logits, attribute-major
    # aux_ref : (N_AUX, BA_PAD, HW) targets / weights / grid / anchors
    # gt_ref  : (BS*MAX_GT*5,) f32 SMEM: per-GT [x1, x2, y1, y2, area]
    # out_ref : (1, 1) SMEM scalar
    shape = (BA_PAD, HW)

    # ---------- self-contained ignore / conf block ----------
    px = pred_ref[0]
    py = pred_ref[1]
    e_x = jnp.exp(-jnp.abs(px))                      # reused for BCE below
    e_y = jnp.exp(-jnp.abs(py))
    sx = jnp.where(px >= 0.0, 1.0, e_x) / (1.0 + e_x)   # sigmoid(px) w/ shared exp
    sy = jnp.where(py >= 0.0, 1.0, e_y) / (1.0 + e_y)
    bw = jnp.exp(pred_ref[2]) * aux_ref[A_AW]
    bh = jnp.exp(pred_ref[3]) * aux_ref[A_AH]
    bx = sx + aux_ref[A_GX]
    by = sy + aux_ref[A_GY]
    bx1 = bx - 0.5 * bw
    bx2 = bx + 0.5 * bw
    by1 = by - 0.5 * bh
    by2 = by + 0.5 * bh
    area_p = bw * bh

    row = lax.broadcasted_iota(jnp.int32, shape, 0)
    ignore = jnp.zeros(shape, jnp.bool_)
    for b in range(BS):
        in_b = jnp.logical_and(row >= b * N_ANCH_SCALE,
                               row < (b + 1) * N_ANCH_SCALE)
        for g in range(MAX_GT):
            base = (b * MAX_GT + g) * 5
            iw = jnp.maximum(jnp.minimum(gt_ref[base + 1], bx2) -
                             jnp.maximum(gt_ref[base + 0], bx1), 0.0)
            ih = jnp.maximum(jnp.minimum(gt_ref[base + 3], by2) -
                             jnp.maximum(gt_ref[base + 2], by1), 0.0)
            inter = iw * ih
            # iou > 0.5  <=>  3*inter > area_p + area_gt   (division-free)
            over = 3.0 * inter > area_p + gt_ref[base + 4]
            ignore = jnp.logical_or(ignore, jnp.logical_and(over, in_b))
    keep = jnp.where(ignore, 0.0, 1.0)

    mask = aux_ref[A_MASK]
    conf_w = (mask + aux_ref[A_NOOBJ] * keep) * (LAMBDA_CONF / BS)
    acc = _bce_logits(pred_ref[4], mask) * conf_w

    # ---------- xy / wh / cls fused accumulation ----------
    wxy = aux_ref[A_WXY]
    acc = acc + _bce_from_exp(px, e_x, aux_ref[A_TX]) * wxy
    acc = acc + _bce_from_exp(py, e_y, aux_ref[A_TY]) * wxy
    wwh = aux_ref[A_WWH]
    acc = acc + (pred_ref[2] - aux_ref[A_TW]) ** 2 * wwh
    acc = acc + (pred_ref[3] - aux_ref[A_TH]) ** 2 * wwh

    cls_acc = _bce_logits(pred_ref[5], aux_ref[A_TCLS0])
    for c in range(1, NUM_CLASSES):
        cls_acc = cls_acc + _bce_logits(pred_ref[5 + c], aux_ref[A_TCLS0 + c])
    acc = acc + cls_acc * (mask * (LAMBDA_CLS / BS))

    out_ref[0, 0] = jnp.sum(acc)


# --------------------- host-side glue (label assignment) --------------------
def jaccard_np(box_a, box_b):
    a_x1 = box_a[:, 0] - box_a[:, 2] / 2
    a_x2 = box_a[:, 0] + box_a[:, 2] / 2
    a_y1 = box_a[:, 1] - box_a[:, 3] / 2
    a_y2 = box_a[:, 1] + box_a[:, 3] / 2
    b_x1 = box_b[:, 0] - box_b[:, 2] / 2
    b_x2 = box_b[:, 0] + box_b[:, 2] / 2
    b_y1 = box_b[:, 1] - box_b[:, 3] / 2
    b_y2 = box_b[:, 1] + box_b[:, 3] / 2
    iw = np.clip(np.minimum(a_x2[:, None], b_x2[None, :]) -
                 np.maximum(a_x1[:, None], b_x1[None, :]), 0, None)
    ih = np.clip(np.minimum(a_y2[:, None], b_y2[None, :]) -
                 np.maximum(a_y1[:, None], b_y1[None, :]), 0, None)
    inter = iw * ih
    area_a = ((a_x2 - a_x1) * (a_y2 - a_y1))[:, None]
    area_b = ((b_x2 - b_x1) * (b_y2 - b_y1))[None, :]
    return inter / (area_a + area_b - inter)


def get_target_np(targets, scaled_anchors, in_w, in_h):
    # TODO(synk): data-dependent scatter (label assignment) stays host-side.
    bs = len(targets)
    A = N_ANCH_SCALE
    idx = FEATURE_LENGTH.index(in_w)
    anchor_index = [[0, 1, 2], [3, 4, 5], [6, 7, 8]][idx]
    subtract_index = [0, 3, 6][idx]
    shape = (bs, A, in_h, in_w)
    mask = np.zeros(shape, np.float32)
    noobj = np.ones(shape, np.float32)
    tx = np.zeros(shape, np.float32)
    ty = np.zeros(shape, np.float32)
    tw = np.zeros(shape, np.float32)
    th = np.zeros(shape, np.float32)
    tcls = np.zeros(shape + (NUM_CLASSES,), np.float32)
    blsx = np.zeros(shape, np.float32)
    blsy = np.zeros(shape, np.float32)
    anchors_arr = np.asarray(scaled_anchors, np.float32)
    anchor_shapes = np.concatenate(
        [np.zeros((NUM_ANCHORS, 2), np.float32), anchors_arr], axis=1)
    for b in range(bs):
        t = np.asarray(targets[b], np.float32)
        if t.shape[0] == 0:
            continue
        gxs = t[:, 0] * in_w
        gys = t[:, 1] * in_h
        gws = t[:, 2] * in_w
        ghs = t[:, 3] * in_h
        gis = np.floor(gxs).astype(np.int64)
        gjs = np.floor(gys).astype(np.int64)
        gt_box = np.stack([np.zeros_like(gws), np.zeros_like(ghs), gws, ghs], 1)
        ious = jaccard_np(gt_box, anchor_shapes)
        best_ns = np.argmax(ious, axis=-1)
        for i, best_n in enumerate(best_ns):
            if best_n not in anchor_index:
                continue
            gi, gj = int(gis[i]), int(gjs[i])
            if gj < in_h and gi < in_w:
                bn = int(best_n) - subtract_index
                noobj[b, bn, gj, gi] = 0
                mask[b, bn, gj, gi] = 1
                tx[b, bn, gj, gi] = gxs[i] - gi
                ty[b, bn, gj, gi] = gys[i] - gj
                tw[b, bn, gj, gi] = math.log(gws[i] / anchors_arr[int(best_n)][0])
                th[b, bn, gj, gi] = math.log(ghs[i] / anchors_arr[int(best_n)][1])
                blsx[b, bn, gj, gi] = t[i, 2]
                blsy[b, bn, gj, gi] = t[i, 3]
                tcls[b, bn, gj, gi, int(t[i, 4])] = 1
    return mask, noobj, tx, ty, tw, th, tcls, blsx, blsy


# ------------------- device-side (jitted, compiled once) --------------------
@jax.jit
def _yolo_loss_device(inp, planes, gt_flat):
    # inp   : (BS, A*BBOX_ATTRS, IN_H, IN_W) raw network output (NCHW)
    # planes: (10, BA, HW) host planes [tx,ty,tw,th,mask,noobj,bls,tcls0..2]
    # gt_flat: (BS*MAX_GT*5,) f32 GT corner/area scalars (padded slots degenerate)
    # attribute-major layout + pad bs*A 6 -> 8 (one-time XLA transpose, ~48 KiB)
    pred = inp.astype(jnp.float32).reshape(BA, BBOX_ATTRS, HW)
    pred = jnp.transpose(pred, (1, 0, 2))
    pred = jnp.pad(pred, ((0, 0), (0, BA_PAD - BA), (0, 0)))

    planes = jnp.pad(planes.astype(jnp.float32), ((0, 0), (0, BA_PAD - BA), (0, 0)))
    mask = planes[4]
    bls = planes[6]
    wxy = (LAMBDA_XY / BS) * bls * mask
    wwh = (0.5 * LAMBDA_WH / BS) * bls * mask
    aux = jnp.concatenate([
        planes[0:6],                       # tx ty tw th mask noobj
        wxy[None], wwh[None],              # fused xy / wh weights
        planes[7:10],                      # tcls0..2
        jnp.asarray(_CONST_PLANES),        # grid_x grid_y anchor_w anchor_h
    ], axis=0)

    vmem = pl.BlockSpec(memory_space=pltpu.MemorySpace.VMEM)
    smem = pl.BlockSpec(memory_space=pltpu.MemorySpace.SMEM)
    # TODO(synk): fuse the 3 YOLO scales into one call with a leading "parallel"
    # grid axis to use both TensorCores on v7x; single-scale here.
    out = pl.pallas_call(
        _yolo_loss_kernel,
        out_shape=jax.ShapeDtypeStruct((1, 1), jnp.float32),
        in_specs=[vmem, vmem, smem],
        out_specs=smem,
    )(pred, aux, gt_flat.astype(jnp.float32))
    return out[0, 0]


# ------------------------------ Pallas wrapper ------------------------------
def yolo_loss_pallas(inp, targets):
    bs, _, in_h, in_w = inp.shape
    assert bs == BS and in_h == IN_H and in_w == IN_W

    # host: data-dependent label assignment only
    mask, noobj, tx, ty, tw, th, tcls, blsx, blsy = get_target_np(
        targets, _SCALED_ANCHORS, in_w, in_h)
    bls = 2.0 - blsx * blsy

    r2 = lambda a: np.asarray(a, np.float32).reshape(BA, HW)
    planes = np.stack(
        [r2(tx), r2(ty), r2(tw), r2(th), r2(mask), r2(noobj), r2(bls)]
        + [r2(tcls[..., c]) for c in range(NUM_CLASSES)], axis=0)   # (10, 6, 256)

    # GT boxes in corner/area form; padded slots are degenerate (IoU = 0)
    gt = np.zeros((BS, MAX_GT, 5), np.float32)
    gt[..., 0:4] = -1e4
    for b in range(bs):
        t = np.asarray(targets[b], np.float32)
        n = t.shape[0]
        assert n <= MAX_GT, "increase MAX_GT"
        if n == 0:
            continue
        cx, cy = t[:n, 0] * in_w, t[:n, 1] * in_h
        gw, gh = t[:n, 2] * in_w, t[:n, 3] * in_h
        gt[b, :n, 0] = cx - gw * 0.5
        gt[b, :n, 1] = cx + gw * 0.5
        gt[b, :n, 2] = cy - gh * 0.5
        gt[b, :n, 3] = cy + gh * 0.5
        gt[b, :n, 4] = gw * gh

    return _yolo_loss_device(inp, planes, gt.reshape(-1))


# --------------------------- numpy reference check --------------------------
def _sigmoid_np(v):
    return 1.0 / (1.0 + np.exp(-v))


def _bce_np(p, t):
    p = np.clip(p, _EPS, 1.0 - _EPS)
    return -t * np.log(p) - (1.0 - t) * np.log(1.0 - p)


def yolo_loss_reference(inp, targets):
    bs, _, in_h, in_w = inp.shape
    scaled_anchors = _SCALED_ANCHORS
    anchor_index = _ANCHOR_INDEX
    pred = inp.reshape(bs, N_ANCH_SCALE, BBOX_ATTRS, in_h, in_w).transpose(0, 1, 3, 4, 2)
    x = _sigmoid_np(pred[..., 0])
    y = _sigmoid_np(pred[..., 1])
    w = pred[..., 2]
    h = pred[..., 3]
    conf = _sigmoid_np(pred[..., 4])
    pcls = _sigmoid_np(pred[..., 5:])
    mask, noobj, tx, ty, tw, th, tcls, blsx, blsy = get_target_np(
        targets, scaled_anchors, in_w, in_h)
    noobj = noobj.copy()
    grid_x = np.arange(in_w, dtype=np.float32)[None, None, None, :]
    grid_y = np.arange(in_h, dtype=np.float32)[None, None, :, None]
    aw = scaled_anchors[anchor_index][:, 0][None, :, None, None]
    ah = scaled_anchors[anchor_index][:, 1][None, :, None, None]
    pb = np.zeros(pred[..., :4].shape, np.float32)
    pb[..., 0] = x + grid_x
    pb[..., 1] = y + grid_y
    pb[..., 2] = np.exp(w) * aw
    pb[..., 3] = np.exp(h) * ah
    for b in range(bs):
        t = np.asarray(targets[b], np.float32)
        if len(t) > 0:
            gt = np.stack([t[:, 0] * in_w, t[:, 1] * in_h,
                           t[:, 2] * in_w, t[:, 3] * in_h], axis=1)
            ious = jaccard_np(gt, pb[b].reshape(-1, 4))
            iou_max = ious.max(axis=0).reshape(pb[b].shape[:3])
            noobj[b][iou_max > IGNORE_THRESH] = 0
    bls = 2.0 - blsx * blsy
    loss_x = np.sum(_bce_np(x, tx) / bs * bls * mask)
    loss_y = np.sum(_bce_np(y, ty) / bs * bls * mask)
    loss_w = np.sum((w - tw) ** 2 / bs * 0.5 * bls * mask)
    loss_h = np.sum((h - th) ** 2 / bs * 0.5 * bls * mask)
    bce_conf = _bce_np(conf, mask)
    loss_conf = np.sum(bce_conf * mask / bs) + np.sum(bce_conf * noobj / bs)
    loss_cls = np.sum(_bce_np(pcls, tcls) / bs * mask[..., None])
    return (loss_x * LAMBDA_XY + loss_y * LAMBDA_XY + loss_w * LAMBDA_WH +
            loss_h * LAMBDA_WH + loss_conf * LAMBDA_CONF + loss_cls * LAMBDA_CLS)


# ----------------------------------- main ------------------------------------
if __name__ == "__main__":
    key = jax.random.PRNGKey(0)
    k_inp, k_t = jax.random.split(key)

    # network output for this YOLO scale: (bs, A*(5+nc), H, W) in NCHW
    inp = jax.random.normal(
        k_inp, (BS, N_ANCH_SCALE * BBOX_ATTRS, IN_H, IN_W), jnp.float32) * 0.5

    # deterministic ground-truth boxes: per image rows of [cx, cy, w, h, cls] in [0,1]
    n_gt = [3, 2]
    targets = []
    for b in range(BS):
        kb = jax.random.fold_in(k_t, b)
        k1, k2, k3 = jax.random.split(kb, 3)
        cxy = jax.random.uniform(k1, (n_gt[b], 2), minval=0.1, maxval=0.9)
        wh = jax.random.uniform(k2, (n_gt[b], 2), minval=0.55, maxval=0.95)
        cls_ = jax.random.randint(k3, (n_gt[b], 1), 0, NUM_CLASSES).astype(jnp.float32)
        targets.append(np.asarray(jnp.concatenate([cxy, wh, cls_], axis=1), np.float32))

    loss = yolo_loss_pallas(inp, targets)
    loss = jax.block_until_ready(loss)

    ref = yolo_loss_reference(np.asarray(inp, np.float32), targets)
    np.testing.assert_allclose(float(loss), float(ref), rtol=5e-3, atol=5e-2)

    print("KERNEL_OK")
</pallas_src>

<mosaic_0001>
module attributes {stable_mosaic.version = 11 : i64} {
  func.func @_yolo_loss_kernel(%arg0: memref<8x8x256xf32, #tpu.memory_space<vmem>>, %arg1: memref<15x8x256xf32, #tpu.memory_space<vmem>>, %arg2: memref<40xf32, #tpu.memory_space<smem>>, %arg3: memref<1x1xf32, #tpu.memory_space<smem>>) attributes {dimension_semantics = [], scalar_prefetch = 0 : i64, scratch_operands = 0 : i64, tpu.core_type = #tpu.core_type<tc>} {
    %c0 = arith.constant 0 : index
    %c0_0 = arith.constant 0 : index
    %c0_1 = arith.constant 0 : index
    %0 = vector.load %arg0[%c0, %c0_0, %c0_1] : memref<8x8x256xf32, #tpu.memory_space<vmem>>, vector<1x8x256xf32>
    %1 = vector.shape_cast %0 : vector<1x8x256xf32> to vector<8x256xf32>
    %c1 = arith.constant 1 : index
    %c0_2 = arith.constant 0 : index
    %c0_3 = arith.constant 0 : index
    %2 = vector.load %arg0[%c1, %c0_2, %c0_3] : memref<8x8x256xf32, #tpu.memory_space<vmem>>, vector<1x8x256xf32>
    %3 = vector.shape_cast %2 : vector<1x8x256xf32> to vector<8x256xf32>
    %4 = math.absf %1 : vector<8x256xf32>
    %cst = arith.constant 0.000000e+00 : f32
    %5 = vector.broadcast %cst : f32 to vector<8x256xf32>
    %6 = arith.subf %5, %4 : vector<8x256xf32>
    %7 = math.exp %6 : vector<8x256xf32>
    %8 = math.absf %3 : vector<8x256xf32>
    %cst_4 = arith.constant 0.000000e+00 : f32
    %9 = vector.broadcast %cst_4 : f32 to vector<8x256xf32>
    %10 = arith.subf %9, %8 : vector<8x256xf32>
    %11 = math.exp %10 : vector<8x256xf32>
    %cst_5 = arith.constant 0.000000e+00 : f32
    %12 = vector.broadcast %cst_5 : f32 to vector<8x256xf32>
    %13 = arith.cmpf oge, %1, %12 : vector<8x256xf32>
    %cst_6 = arith.constant 1.000000e+00 : f32
    %14 = vector.broadcast %cst_6 : f32 to vector<8x256xf32>
    %15 = arith.select %13, %14, %7 : vector<8x256xi1>, vector<8x256xf32>
    %cst_7 = arith.constant 1.000000e+00 : f32
    %16 = vector.broadcast %cst_7 : f32 to vector<8x256xf32>
    %17 = arith.addf %16, %7 : vector<8x256xf32>
    %18 = arith.divf %15, %17 : vector<8x256xf32>
    %cst_8 = arith.constant 0.000000e+00 : f32
    %19 = vector.broadcast %cst_8 : f32 to vector<8x256xf32>
    %20 = arith.cmpf oge, %3, %19 : vector<8x256xf32>
    %cst_9 = arith.constant 1.000000e+00 : f32
    %21 = vector.broadcast %cst_9 : f32 to vector<8x256xf32>
    %22 = arith.select %20, %21, %11 : vector<8x256xi1>, vector<8x256xf32>
    %cst_10 = arith.constant 1.000000e+00 : f32
    %23 = vector.broadcast %cst_10 : f32 to vector<8x256xf32>
    %24 = arith.addf %23, %11 : vector<8x256xf32>
    %25 = arith.divf %22, %24 : vector<8x256xf32>
    %c2 = arith.constant 2 : index
    %c0_11 = arith.constant 0 : index
    %c0_12 = arith.constant 0 : index
    %26 = vector.load %arg0[%c2, %c0_11, %c0_12] : memref<8x8x256xf32, #tpu.memory_space<vmem>>, vector<1x8x256xf32>
    %27 = vector.shape_cast %26 : vector<1x8x256xf32> to vector<8x256xf32>
    %28 = math.exp %27 : vector<8x256xf32>
    %c13 = arith.constant 13 : index
    %c0_13 = arith.constant 0 : index
    %c0_14 = arith.constant 0 : index
    %29 = vector.load %arg1[%c13, %c0_13, %c0_14] : memref<15x8x256xf32, #tpu.memory_space<vmem>>, vector<1x8x256xf32>
    %30 = vector.shape_cast %29 : vector<1x8x256xf32> to vector<8x256xf32>
    %31 = arith.mulf %28, %30 : vector<8x256xf32>
    %c3 = arith.constant 3 : index
    %c0_15 = arith.constant 0 : index
    %c0_16 = arith.constant 0 : index
    %32 = vector.load %arg0[%c3, %c0_15, %c0_16] : memref<8x8x256xf32, #tpu.memory_space<vmem>>, vector<1x8x256xf32>
    %33 = vector.shape_cast %32 : vector<1x8x256xf32> to vector<8x256xf32>
    %34 = math.exp %33 : vector<8x256xf32>
    %c14 = arith.constant 14 : index
    %c0_17 = arith.constant 0 : index
    %c0_18 = arith.constant 0 : index
    %35 = vector.load %arg1[%c14, %c0_17, %c0_18] : memref<15x8x256xf32, #tpu.memory_space<vmem>>, vector<1x8x256xf32>
    %36 = vector.shape_cast %35 : vector<1x8x256xf32> to vector<8x256xf32>
    %37 = arith.mulf %34, %36 : vector<8x256xf32>
    %c11 = arith.constant 11 : index
    %c0_19 = arith.constant 0 : index
    %c0_20 = arith.constant 0 : index
    %38 = vector.load %arg1[%c11, %c0_19, %c0_20] : memref<15x8x256xf32, #tpu.memory_space<vmem>>, vector<1x8x256xf32>
    %39 = vector.shape_cast %38 : vector<1x8x256xf32> to vector<8x256xf32>
    %40 = arith.addf %18, %39 : vector<8x256xf32>
    %c12 = arith.constant 12 : index
    %c0_21 = arith.constant 0 : index
    %c0_22 = arith.constant 0 : index
    %41 = vector.load %arg1[%c12, %c0_21, %c0_22] : memref<15x8x256xf32, #tpu.memory_space<vmem>>, vector<1x8x256xf32>
    %42 = vector.shape_cast %41 : vector<1x8x256xf32> to vector<8x256xf32>
    %43 = arith.addf %25, %42 : vector<8x256xf32>
    %cst_23 = arith.constant 5.000000e-01 : f32
    %44 = vector.broadcast %cst_23 : f32 to vector<8x256xf32>
    %45 = arith.mulf %44, %31 : vector<8x256xf32>
    %46 = arith.subf %40, %45 : vector<8x256xf32>
    %cst_24 = arith.constant 5.000000e-01 : f32
    %47 = vector.broadcast %cst_24 : f32 to vector<8x256xf32>
    %48 = arith.mulf %47, %31 : vector<8x256xf32>
    %49 = arith.addf %40, %48 : vector<8x256xf32>
    %cst_25 = arith.constant 5.000000e-01 : f32
    %50 = vector.broadcast %cst_25 : f32 to vector<8x256xf32>
    %51 = arith.mulf %50, %37 : vector<8x256xf32>
    %52 = arith.subf %43, %51 : vector<8x256xf32>
    %cst_26 = arith.constant 5.000000e-01 : f32
    %53 = vector.broadcast %cst_26 : f32 to vector<8x256xf32>
    %54 = arith.mulf %53, %37 : vector<8x256xf32>
    %55 = arith.addf %43, %54 : vector<8x256xf32>
    %56 = arith.mulf %31, %37 : vector<8x256xf32>
    %57 = tpu.iota {dimensions = array<i32: 0>} : vector<8x256xi32>
    %false = arith.constant false
    %58 = vector.broadcast %false : i1 to vector<8x256xi1>
    %c0_i32 = arith.constant 0 : i32
    %59 = vector.broadcast %c0_i32 : i32 to vector<8x256xi32>
    %60 = arith.cmpi sge, %57, %59 : vector<8x256xi32>
    %c3_i32 = arith.constant 3 : i32
    %61 = vector.broadcast %c3_i32 : i32 to vector<8x256xi32>
    %62 = arith.cmpi slt, %57, %61 : vector<8x256xi32>
    %63 = arith.andi %60, %62 : vector<8x256xi1>
    %c1_27 = arith.constant 1 : index
    %64 = memref.load %arg2[%c1_27] : memref<40xf32, #tpu.memory_space<smem>>
    %65 = vector.broadcast %64 : f32 to vector<8x256xf32>
    %66 = arith.minimumf %65, %49 : vector<8x256xf32>
    %c0_28 = arith.constant 0 : index
    %67 = memref.load %arg2[%c0_28] : memref<40xf32, #tpu.memory_space<smem>>
    %68 = vector.broadcast %67 : f32 to vector<8x256xf32>
    %69 = arith.maximumf %68, %46 : vector<8x256xf32>
    %70 = arith.subf %66, %69 : vector<8x256xf32>
    %cst_29 = arith.constant 0.000000e+00 : f32
    %71 = vector.broadcast %cst_29 : f32 to vector<8x256xf32>
    %72 = arith.maximumf %70, %71 : vector<8x256xf32>
    %c3_30 = arith.constant 3 : index
    %73 = memref.load %arg2[%c3_30] : memref<40xf32, #tpu.memory_space<smem>>
    %74 = vector.broadcast %73 : f32 to vector<8x256xf32>
    %75 = arith.minimumf %74, %55 : vector<8x256xf32>
    %c2_31 = arith.constant 2 : index
    %76 = memref.load %arg2[%c2_31] : memref<40xf32, #tpu.memory_space<smem>>
    %77 = vector.broadcast %76 : f32 to vector<8x256xf32>
    %78 = arith.maximumf %77, %52 : vector<8x256xf32>
    %79 = arith.subf %75, %78 : vector<8x256xf32>
    %cst_32 = arith.constant 0.000000e+00 : f32
    %80 = vector.broadcast %cst_32 : f32 to vector<8x256xf32>
    %81 = arith.maximumf %79, %80 : vector<8x256xf32>
    %82 = arith.mulf %72, %81 : vector<8x256xf32>
    %cst_33 = arith.constant 3.000000e+00 : f32
    %83 = vector.broadcast %cst_33 : f32 to vector<8x256xf32>
    %84 = arith.mulf %83, %82 : vector<8x256xf32>
    %c4 = arith.constant 4 : index
    %85 = memref.load %arg2[%c4] : memref<40xf32, #tpu.memory_space<smem>>
    %86 = vector.broadcast %85 : f32 to vector<8x256xf32>
    %87 = arith.addf %56, %86 : vector<8x256xf32>
    %88 = arith.cmpf ogt, %84, %87 : vector<8x256xf32>
    %89 = arith.andi %88, %63 : vector<8x256xi1>
    %90 = arith.ori %58, %89 : vector<8x256xi1>
    %c6 = arith.constant 6 : index
    %91 = memref.load %arg2[%c6] : memref<40xf32, #tpu.memory_space<smem>>
    %92 = vector.broadcast %91 : f32 to vector<8x256xf32>
    %93 = arith.minimumf %92, %49 : vector<8x256xf32>
    %c5 = arith.constant 5 : index
    %94 = memref.load %arg2[%c5] : memref<40xf32, #tpu.memory_space<smem>>
    %95 = vector.broadcast %94 : f32 to vector<8x256xf32>
    %96 = arith.maximumf %95, %46 : vector<8x256xf32>
    %97 = arith.subf %93, %96 : vector<8x256xf32>
    %cst_34 = arith.constant 0.000000e+00 : f32
    %98 = vector.broadcast %cst_34 : f32 to vector<8x256xf32>
    %99 = arith.maximumf %97, %98 : vector<8x256xf32>
    %c8 = arith.constant 8 : index
    %100 = memref.load %arg2[%c8] : memref<40xf32, #tpu.memory_space<smem>>
    %101 = vector.broadcast %100 : f32 to vector<8x256xf32>
    %102 = arith.minimumf %101, %55 : vector<8x256xf32>
    %c7 = arith.constant 7 : index
    %103 = memref.load %arg2[%c7] : memref<40xf32, #tpu.memory_space<smem>>
    %104 = vector.broadcast %103 : f32 to vector<8x256xf32>
    %105 = arith.maximumf %104, %52 : vector<8x256xf32>
    %106 = arith.subf %102, %105 : vector<8x256xf32>
    %cst_35 = arith.constant 0.000000e+00 : f32
    %107 = vector.broadcast %cst_35 : f32 to vector<8x256xf32>
    %108 = arith.maximumf %106, %107 : vector<8x256xf32>
    %109 = arith.mulf %99, %108 : vector<8x256xf32>
    %cst_36 = arith.constant 3.000000e+00 : f32
    %110 = vector.broadcast %cst_36 : f32 to vector<8x256xf32>
    %111 = arith.mulf %110, %109 : vector<8x256xf32>
    %c9 = arith.constant 9 : index
    %112 = memref.load %arg2[%c9] : memref<40xf32, #tpu.memory_space<smem>>
    %113 = vector.broadcast %112 : f32 to vector<8x256xf32>
    %114 = arith.addf %56, %113 : vector<8x256xf32>
    %115 = arith.cmpf ogt, %111, %114 : vector<8x256xf32>
    %116 = arith.andi %115, %63 : vector<8x256xi1>
    %117 = arith.ori %90, %116 : vector<8x256xi1>
    %c11_37 = arith.constant 11 : index
    %118 = memref.load %arg2[%c11_37] : memref<40xf32, #tpu.memory_space<smem>>
    %119 = vector.broadcast %118 : f32 to vector<8x256xf32>
    %120 = arith.minimumf %119, %49 : vector<8x256xf32>
    %c10 = arith.constant 10 : index
    %121 = memref.load %arg2[%c10] : memref<40xf32, #tpu.memory_space<smem>>
    %122 = vector.broadcast %121 : f32 to vector<8x256xf32>
    %123 = arith.maximumf %122, %46 : vector<8x256xf32>
    %124 = arith.subf %120, %123 : vector<8x256xf32>
    %cst_38 = arith.constant 0.000000e+00 : f32
    %125 = vector.broadcast %cst_38 : f32 to vector<8x256xf32>
    %126 = arith.maximumf %124, %125 : vector<8x256xf32>
    %c13_39 = arith.constant 13 : index
    %127 = memref.load %arg2[%c13_39] : memref<40xf32, #tpu.memory_space<smem>>
    %128 = vector.broadcast %127 : f32 to vector<8x256xf32>
    %129 = arith.minimumf %128, %55 : vector<8x256xf32>
    %c12_40 = arith.constant 12 : index
    %130 = memref.load %arg2[%c12_40] : memref<40xf32, #tpu.memory_space<smem>>
    %131 = vector.broadcast %130 : f32 to vector<8x256xf32>
    %132 = arith.maximumf %131, %52 : vector<8x256xf32>
    %133 = arith.subf %129, %132 : vector<8x256xf32>
    %cst_41 = arith.constant 0.000000e+00 : f32
    %134 = vector.broadcast %cst_41 : f32 to vector<8x256xf32>
    %135 = arith.maximumf %133, %134 : vector<8x256xf32>
    %136 = arith.mulf %126, %135 : vector<8x256xf32>
    %cst_42 = arith.constant 3.000000e+00 : f32
    %137 = vector.broadcast %cst_42 : f32 to vector<8x256xf32>
    %138 = arith.mulf %137, %136 : vector<8x256xf32>
    %c14_43 = arith.constant 14 : index
    %139 = memref.load %arg2[%c14_43] : memref<40xf32, #tpu.memory_space<smem>>
    %140 = vector.broadcast %139 : f32 to vector<8x256xf32>
    %141 = arith.addf %56, %140 : vector<8x256xf32>
    %142 = arith.cmpf ogt, %138, %141 : vector<8x256xf32>
    %143 = arith.andi %142, %63 : vector<8x256xi1>
    %144 = arith.ori %117, %143 : vector<8x256xi1>
    %c16 = arith.constant 16 : index
    %145 = memref.load %arg2[%c16] : memref<40xf32, #tpu.memory_space<smem>>
    %146 = vector.broadcast %145 : f32 to vector<8x256xf32>
    %147 = arith.minimumf %146, %49 : vector<8x256xf32>
    %c15 = arith.constant 15 : index
    %148 = memref.load %arg2[%c15] : memref<40xf32, #tpu.memory_space<smem>>
    %149 = vector.broadcast %148 : f32 to vector<8x256xf32>
    %150 = arith.maximumf %149, %46 : vector<8x256xf32>
    %151 = arith.subf %147, %150 : vector<8x256xf32>
    %cst_44 = arith.constant 0.000000e+00 : f32
    %152 = vector.broadcast %cst_44 : f32 to vector<8x256xf32>
    %153 = arith.maximumf %151, %152 : vector<8x256xf32>
    %c18 = arith.constant 18 : index
    %154 = memref.load %arg2[%c18] : memref<40xf32, #tpu.memory_space<smem>>
    %155 = vector.broadcast %154 : f32 to vector<8x256xf32>
    %156 = arith.minimumf %155, %55 : vector<8x256xf32>
    %c17 = arith.constant 17 : index
    %157 = memref.load %arg2[%c17] : memref<40xf32, #tpu.memory_space<smem>>
    %158 = vector.broadcast %157 : f32 to vector<8x256xf32>
    %159 = arith.maximumf %158, %52 : vector<8x256xf32>
    %160 = arith.subf %156, %159 : vector<8x256xf32>
    %cst_45 = arith.constant 0.000000e+00 : f32
    %161 = vector.broadcast %cst_45 : f32 to vector<8x256xf32>
    %162 = arith.maximumf %160, %161 : vector<8x256xf32>
    %163 = arith.mulf %153, %162 : vector<8x256xf32>
    %cst_46 = arith.constant 3.000000e+00 : f32
    %164 = vector.broadcast %cst_46 : f32 to vector<8x256xf32>
    %165 = arith.mulf %164, %163 : vector<8x256xf32>
    %c19 = arith.constant 19 : index
    %166 = memref.load %arg2[%c19] : memref<40xf32, #tpu.memory_space<smem>>
    %167 = vector.broadcast %166 : f32 to vector<8x256xf32>
    %168 = arith.addf %56, %167 : vector<8x256xf32>
    %169 = arith.cmpf ogt, %165, %168 : vector<8x256xf32>
    %170 = arith.andi %169, %63 : vector<8x256xi1>
    %171 = arith.ori %144, %170 : vector<8x256xi1>
    %c3_i32_47 = arith.constant 3 : i32
    %172 = vector.broadcast %c3_i32_47 : i32 to vector<8x256xi32>
    %173 = arith.cmpi sge, %57, %172 : vector<8x256xi32>
    %c6_i32 = arith.constant 6 : i32
    %174 = vector.broadcast %c6_i32 : i32 to vector<8x256xi32>
    %175 = arith.cmpi slt, %57, %174 : vector<8x256xi32>
    %176 = arith.andi %173, %175 : vector<8x256xi1>
    %c21 = arith.constant 21 : index
    %177 = memref.load %arg2[%c21] : memref<40xf32, #tpu.memory_space<smem>>
    %178 = vector.broadcast %177 : f32 to vector<8x256xf32>
    %179 = arith.minimumf %178, %49 : vector<8x256xf32>
    %c20 = arith.constant 20 : index
    %180 = memref.load %arg2[%c20] : memref<40xf32, #tpu.memory_space<smem>>
    %181 = vector.broadcast %180 : f32 to vector<8x256xf32>
    %182 = arith.maximumf %181, %46 : vector<8x256xf32>
    %183 = arith.subf %179, %182 : vector<8x256xf32>
    %cst_48 = arith.constant 0.000000e+00 : f32
    %184 = vector.broadcast %cst_48 : f32 to vector<8x256xf32>
    %185 = arith.maximumf %183, %184 : vector<8x256xf32>
    %c23 = arith.constant 23 : index
    %186 = memref.load %arg2[%c23] : memref<40xf32, #tpu.memory_space<smem>>
    %187 = vector.broadcast %186 : f32 to vector<8x256xf32>
    %188 = arith.minimumf %187, %55 : vector<8x256xf32>
    %c22 = arith.constant 22 : index
    %189 = memref.load %arg2[%c22] : memref<40xf32, #tpu.memory_space<smem>>
    %190 = vector.broadcast %189 : f32 to vector<8x256xf32>
    %191 = arith.maximumf %190, %52 : vector<8x256xf32>
    %192 = arith.subf %188, %191 : vector<8x256xf32>
    %cst_49 = arith.constant 0.000000e+00 : f32
    %193 = vector.broadcast %cst_49 : f32 to vector<8x256xf32>
    %194 = arith.maximumf %192, %193 : vector<8x256xf32>
    %195 = arith.mulf %185, %194 : vector<8x256xf32>
    %cst_50 = arith.constant 3.000000e+00 : f32
    %196 = vector.broadcast %cst_50 : f32 to vector<8x256xf32>
    %197 = arith.mulf %196, %195 : vector<8x256xf32>
    %c24 = arith.constant 24 : index
    %198 = memref.load %arg2[%c24] : memref<40xf32, #tpu.memory_space<smem>>
    %199 = vector.broadcast %198 : f32 to vector<8x256xf32>
    %200 = arith.addf %56, %199 : vector<8x256xf32>
    %201 = arith.cmpf ogt, %197, %200 : vector<8x256xf32>
    %202 = arith.andi %201, %176 : vector<8x256xi1>
    %203 = arith.ori %171, %202 : vector<8x256xi1>
    %c26 = arith.constant 26 : index
    %204 = memref.load %arg2[%c26] : memref<40xf32, #tpu.memory_space<smem>>
    %205 = vector.broadcast %204 : f32 to vector<8x256xf32>
    %206 = arith.minimumf %205, %49 : vector<8x256xf32>
    %c25 = arith.constant 25 : index
    %207 = memref.load %arg2[%c25] : memref<40xf32, #tpu.memory_space<smem>>
    %208 = vector.broadcast %207 : f32 to vector<8x256xf32>
    %209 = arith.maximumf %208, %46 : vector<8x256xf32>
    %210 = arith.subf %206, %209 : vector<8x256xf32>
    %cst_51 = arith.constant 0.000000e+00 : f32
    %211 = vector.broadcast %cst_51 : f32 to vector<8x256xf32>
    %212 = arith.maximumf %210, %211 : vector<8x256xf32>
    %c28 = arith.constant 28 : index
    %213 = memref.load %arg2[%c28] : memref<40xf32, #tpu.memory_space<smem>>
    %214 = vector.broadcast %213 : f32 to vector<8x256xf32>
    %215 = arith.minimumf %214, %55 : vector<8x256xf32>
    %c27 = arith.constant 27 : index
    %216 = memref.load %arg2[%c27] : memref<40xf32, #tpu.memory_space<smem>>
    %217 = vector.broadcast %216 : f32 to vector<8x256xf32>
    %218 = arith.maximumf %217, %52 : vector<8x256xf32>
    %219 = arith.subf %215, %218 : vector<8x256xf32>
    %cst_52 = arith.constant 0.000000e+00 : f32
    %220 = vector.broadcast %cst_52 : f32 to vector<8x256xf32>
    %221 = arith.maximumf %219, %220 : vector<8x256xf32>
    %222 = arith.mulf %212, %221 : vector<8x256xf32>
    %cst_53 = arith.constant 3.000000e+00 : f32
    %223 = vector.broadcast %cst_53 : f32 to vector<8x256xf32>
    %224 = arith.mulf %223, %222 : vector<8x256xf32>
    %c29 = arith.constant 29 : index
    %225 = memref.load %arg2[%c29] : memref<40xf32, #tpu.memory_space<smem>>
    %226 = vector.broadcast %225 : f32 to vector<8x256xf32>
    %227 = arith.addf %56, %226 : vector<8x256xf32>
    %228 = arith.cmpf ogt, %224, %227 : vector<8x256xf32>
    %229 = arith.andi %228, %176 : vector<8x256xi1>
    %230 = arith.ori %203, %229 : vector<8x256xi1>
    %c31 = arith.constant 31 : index
    %231 = memref.load %arg2[%c31] : memref<40xf32, #tpu.memory_space<smem>>
    %232 = vector.broadcast %231 : f32 to vector<8x256xf32>
    %233 = arith.minimumf %232, %49 : vector<8x256xf32>
    %c30 = arith.constant 30 : index
    %234 = memref.load %arg2[%c30] : memref<40xf32, #tpu.memory_space<smem>>
    %235 = vector.broadcast %234 : f32 to vector<8x256xf32>
    %236 = arith.maximumf %235, %46 : vector<8x256xf32>
    %237 = arith.subf %233, %236 : vector<8x256xf32>
    %cst_54 = arith.constant 0.000000e+00 : f32
    %238 = vector.broadcast %cst_54 : f32 to vector<8x256xf32>
    %239 = arith.maximumf %237, %238 : vector<8x256xf32>
    %c33 = arith.constant 33 : index
    %240 = memref.load %arg2[%c33] : memref<40xf32, #tpu.memory_space<smem>>
    %241 = vector.broadcast %240 : f32 to vector<8x256xf32>
    %242 = arith.minimumf %241, %55 : vector<8x256xf32>
    %c32 = arith.constant 32 : index
    %243 = memref.load %arg2[%c32] : memref<40xf32, #tpu.memory_space<smem>>
    %244 = vector.broadcast %243 : f32 to vector<8x256xf32>
    %245 = arith.maximumf %244, %52 : vector<8x256xf32>
    %246 = arith.subf %242, %245 : vector<8x256xf32>
    %cst_55 = arith.constant 0.000000e+00 : f32
    %247 = vector.broadcast %cst_55 : f32 to vector<8x256xf32>
    %248 = arith.maximumf %246, %247 : vector<8x256xf32>
    %249 = arith.mulf %239, %248 : vector<8x256xf32>
    %cst_56 = arith.constant 3.000000e+00 : f32
    %250 = vector.broadcast %cst_56 : f32 to vector<8x256xf32>
    %251 = arith.mulf %250, %249 : vector<8x256xf32>
    %c34 = arith.constant 34 : index
    %252 = memref.load %arg2[%c34] : memref<40xf32, #tpu.memory_space<smem>>
    %253 = vector.broadcast %252 : f32 to vector<8x256xf32>
    %254 = arith.addf %56, %253 : vector<8x256xf32>
    %255 = arith.cmpf ogt, %251, %254 : vector<8x256xf32>
    %256 = arith.andi %255, %176 : vector<8x256xi1>
    %257 = arith.ori %230, %256 : vector<8x256xi1>
    %c36 = arith.constant 36 : index
    %258 = memref.load %arg2[%c36] : memref<40xf32, #tpu.memory_space<smem>>
    %259 = vector.broadcast %258 : f32 to vector<8x256xf32>
    %260 = arith.minimumf %259, %49 : vector<8x256xf32>
    %c35 = arith.constant 35 : index
    %261 = memref.load %arg2[%c35] : memref<40xf32, #tpu.memory_space<smem>>
    %262 = vector.broadcast %261 : f32 to vector<8x256xf32>
    %263 = arith.maximumf %262, %46 : vector<8x256xf32>
    %264 = arith.subf %260, %263 : vector<8x256xf32>
    %cst_57 = arith.constant 0.000000e+00 : f32
    %265 = vector.broadcast %cst_57 : f32 to vector<8x256xf32>
    %266 = arith.maximumf %264, %265 : vector<8x256xf32>
    %c38 = arith.constant 38 : index
    %267 = memref.load %arg2[%c38] : memref<40xf32, #tpu.memory_space<smem>>
    %268 = vector.broadcast %267 : f32 to vector<8x256xf32>
    %269 = arith.minimumf %268, %55 : vector<8x256xf32>
    %c37 = arith.constant 37 : index
    %270 = memref.load %arg2[%c37] : memref<40xf32, #tpu.memory_space<smem>>
    %271 = vector.broadcast %270 : f32 to vector<8x256xf32>
    %272 = arith.maximumf %271, %52 : vector<8x256xf32>
    %273 = arith.subf %269, %272 : vector<8x256xf32>
    %cst_58 = arith.constant 0.000000e+00 : f32
    %274 = vector.broadcast %cst_58 : f32 to vector<8x256xf32>
    %275 = arith.maximumf %273, %274 : vector<8x256xf32>
    %276 = arith.mulf %266, %275 : vector<8x256xf32>
    %cst_59 = arith.constant 3.000000e+00 : f32
    %277 = vector.broadcast %cst_59 : f32 to vector<8x256xf32>
    %278 = arith.mulf %277, %276 : vector<8x256xf32>
    %c39 = arith.constant 39 : index
    %279 = memref.load %arg2[%c39] : memref<40xf32, #tpu.memory_space<smem>>
    %280 = vector.broadcast %279 : f32 to vector<8x256xf32>
    %281 = arith.addf %56, %280 : vector<8x256xf32>
    %282 = arith.cmpf ogt, %278, %281 : vector<8x256xf32>
    %283 = arith.andi %282, %176 : vector<8x256xi1>
    %284 = arith.ori %257, %283 : vector<8x256xi1>
    %cst_60 = arith.constant 0.000000e+00 : f32
    %cst_61 = arith.constant 1.000000e+00 : f32
    %285 = vector.broadcast %cst_60 : f32 to vector<8x256xf32>
    %286 = vector.broadcast %cst_61 : f32 to vector<8x256xf32>
    %287 = arith.select %284, %285, %286 : vector<8x256xi1>, vector<8x256xf32>
    %c4_62 = arith.constant 4 : index
    %c0_63 = arith.constant 0 : index
    %c0_64 = arith.constant 0 : index
    %288 = vector.load %arg1[%c4_62, %c0_63, %c0_64] : memref<15x8x256xf32, #tpu.memory_space<vmem>>, vector<1x8x256xf32>
    %289 = vector.shape_cast %288 : vector<1x8x256xf32> to vector<8x256xf32>
    %c5_65 = arith.constant 5 : index
    %c0_66 = arith.constant 0 : index
    %c0_67 = arith.constant 0 : index
    %290 = vector.load %arg1[%c5_65, %c0_66, %c0_67] : memref<15x8x256xf32, #tpu.memory_space<vmem>>, vector<1x8x256xf32>
    %291 = vector.shape_cast %290 : vector<1x8x256xf32> to vector<8x256xf32>
    %292 = arith.mulf %291, %287 : vector<8x256xf32>
    %293 = arith.addf %289, %292 : vector<8x256xf32>
    %cst_68 = arith.constant 5.000000e-01 : f32
    %294 = vector.broadcast %cst_68 : f32 to vector<8x256xf32>
    %295 = arith.mulf %293, %294 : vector<8x256xf32>
    %c4_69 = arith.constant 4 : index
    %c0_70 = arith.constant 0 : index
    %c0_71 = arith.constant 0 : index
    %296 = vector.load %arg0[%c4_69, %c0_70, %c0_71] : memref<8x8x256xf32, #tpu.memory_space<vmem>>, vector<1x8x256xf32>
    %297 = vector.shape_cast %296 : vector<1x8x256xf32> to vector<8x256xf32>
    %298 = math.absf %297 : vector<8x256xf32>
    %cst_72 = arith.constant 0.000000e+00 : f32
    %299 = vector.broadcast %cst_72 : f32 to vector<8x256xf32>
    %300 = arith.subf %299, %298 : vector<8x256xf32>
    %301 = math.exp %300 : vector<8x256xf32>
    %cst_73 = arith.constant 0.000000e+00 : f32
    %302 = vector.broadcast %cst_73 : f32 to vector<8x256xf32>
    %303 = arith.maximumf %297, %302 : vector<8x256xf32>
    %304 = arith.mulf %297, %289 : vector<8x256xf32>
    %305 = arith.subf %303, %304 : vector<8x256xf32>
    %cst_74 = arith.constant 1.000000e+00 : f32
    %306 = vector.broadcast %cst_74 : f32 to vector<8x256xf32>
    %307 = arith.addf %306, %301 : vector<8x256xf32>
    %308 = math.log %307 : vector<8x256xf32>
    %309 = arith.addf %305, %308 : vector<8x256xf32>
    %310 = arith.mulf %309, %295 : vector<8x256xf32>
    %c6_75 = arith.constant 6 : index
    %c0_76 = arith.constant 0 : index
    %c0_77 = arith.constant 0 : index
    %311 = vector.load %arg1[%c6_75, %c0_76, %c0_77] : memref<15x8x256xf32, #tpu.memory_space<vmem>>, vector<1x8x256xf32>
    %312 = vector.shape_cast %311 : vector<1x8x256xf32> to vector<8x256xf32>
    %c0_78 = arith.constant 0 : index
    %c0_79 = arith.constant 0 : index
    %c0_80 = arith.constant 0 : index
    %313 = vector.load %arg1[%c0_78, %c0_79, %c0_80] : memref<15x8x256xf32, #tpu.memory_space<vmem>>, vector<1x8x256xf32>
    %314 = vector.shape_cast %313 : vector<1x8x256xf32> to vector<8x256xf32>
    %cst_81 = arith.constant 0.000000e+00 : f32
    %315 = vector.broadcast %cst_81 : f32 to vector<8x256xf32>
    %316 = arith.maximumf %1, %315 : vector<8x256xf32>
    %317 = arith.mulf %1, %314 : vector<8x256xf32>
    %318 = arith.subf %316, %317 : vector<8x256xf32>
    %cst_82 = arith.constant 1.000000e+00 : f32
    %319 = vector.broadcast %cst_82 : f32 to vector<8x256xf32>
    %320 = arith.addf %319, %7 : vector<8x256xf32>
    %321 = math.log %320 : vector<8x256xf32>
    %322 = arith.addf %318, %321 : vector<8x256xf32>
    %323 = arith.mulf %322, %312 : vector<8x256xf32>
    %324 = arith.addf %310, %323 : vector<8x256xf32>
    %c1_83 = arith.constant 1 : index
    %c0_84 = arith.constant 0 : index
    %c0_85 = arith.constant 0 : index
    %325 = vector.load %arg1[%c1_83, %c0_84, %c0_85] : memref<15x8x256xf32, #tpu.memory_space<vmem>>, vector<1x8x256xf32>
    %326 = vector.shape_cast %325 : vector<1x8x256xf32> to vector<8x256xf32>
    %cst_86 = arith.constant 0.000000e+00 : f32
    %327 = vector.broadcast %cst_86 : f32 to vector<8x256xf32>
    %328 = arith.maximumf %3, %327 : vector<8x256xf32>
    %329 = arith.mulf %3, %326 : vector<8x256xf32>
    %330 = arith.subf %328, %329 : vector<8x256xf32>
    %cst_87 = arith.constant 1.000000e+00 : f32
    %331 = vector.broadcast %cst_87 : f32 to vector<8x256xf32>
    %332 = arith.addf %331, %11 : vector<8x256xf32>
    %333 = math.log %332 : vector<8x256xf32>
    %334 = arith.addf %330, %333 : vector<8x256xf32>
    %335 = arith.mulf %334, %312 : vector<8x256xf32>
    %336 = arith.addf %324, %335 : vector<8x256xf32>
    %c7_88 = arith.constant 7 : index
    %c0_89 = arith.constant 0 : index
    %c0_90 = arith.constant 0 : index
    %337 = vector.load %arg1[%c7_88, %c0_89, %c0_90] : memref<15x8x256xf32, #tpu.memory_space<vmem>>, vector<1x8x256xf32>
    %338 = vector.shape_cast %337 : vector<1x8x256xf32> to vector<8x256xf32>
    %c2_91 = arith.constant 2 : index
    %c0_92 = arith.constant 0 : index
    %c0_93 = arith.constant 0 : index
    %339 = vector.load %arg0[%c2_91, %c0_92, %c0_93] : memref<8x8x256xf32, #tpu.memory_space<vmem>>, vector<1x8x256xf32>
    %340 = vector.shape_cast %339 : vector<1x8x256xf32> to vector<8x256xf32>
    %c2_94 = arith.constant 2 : index
    %c0_95 = arith.constant 0 : index
    %c0_96 = arith.constant 0 : index
    %341 = vector.load %arg1[%c2_94, %c0_95, %c0_96] : memref<15x8x256xf32, #tpu.memory_space<vmem>>, vector<1x8x256xf32>
    %342 = vector.shape_cast %341 : vector<1x8x256xf32> to vector<8x256xf32>
    %343 = arith.subf %340, %342 : vector<8x256xf32>
    %344 = arith.mulf %343, %343 : vector<8x256xf32>
    %345 = arith.mulf %344, %338 : vector<8x256xf32>
    %346 = arith.addf %336, %345 : vector<8x256xf32>
    %c3_97 = arith.constant 3 : index
    %c0_98 = arith.constant 0 : index
    %c0_99 = arith.constant 0 : index
    %347 = vector.load %arg0[%c3_97, %c0_98, %c0_99] : memref<8x8x256xf32, #tpu.memory_space<vmem>>, vector<1x8x256xf32>
    %348 = vector.shape_cast %347 : vector<1x8x256xf32> to vector<8x256xf32>
    %c3_100 = arith.constant 3 : index
    %c0_101 = arith.constant 0 : index
    %c0_102 = arith.constant 0 : index
    %349 = vector.load %arg1[%c3_100, %c0_101, %c0_102] : memref<15x8x256xf32, #tpu.memory_space<vmem>>, vector<1x8x256xf32>
    %350 = vector.shape_cast %349 : vector<1x8x256xf32> to vector<8x256xf32>
    %351 = arith.subf %348, %350 : vector<8x256xf32>
    %352 = arith.mulf %351, %351 : vector<8x256xf32>
    %353 = arith.mulf %352, %338 : vector<8x256xf32>
    %354 = arith.addf %346, %353 : vector<8x256xf32>
    %c5_103 = arith.constant 5 : index
    %c0_104 = arith.constant 0 : index
    %c0_105 = arith.constant 0 : index
    %355 = vector.load %arg0[%c5_103, %c0_104, %c0_105] : memref<8x8x256xf32, #tpu.memory_space<vmem>>, vector<1x8x256xf32>
    %356 = vector.shape_cast %355 : vector<1x8x256xf32> to vector<8x256xf32>
    %c8_106 = arith.constant 8 : index
    %c0_107 = arith.constant 0 : index
    %c0_108 = arith.constant 0 : index
    %357 = vector.load %arg1[%c8_106, %c0_107, %c0_108] : memref<15x8x256xf32, #tpu.memory_space<vmem>>, vector<1x8x256xf32>
    %358 = vector.shape_cast %357 : vector<1x8x256xf32> to vector<8x256xf32>
    %359 = math.absf %356 : vector<8x256xf32>
    %cst_109 = arith.constant 0.000000e+00 : f32
    %360 = vector.broadcast %cst_109 : f32 to vector<8x256xf32>
    %361 = arith.subf %360, %359 : vector<8x256xf32>
    %362 = math.exp %361 : vector<8x256xf32>
    %cst_110 = arith.constant 0.000000e+00 : f32
    %363 = vector.broadcast %cst_110 : f32 to vector<8x256xf32>
    %364 = arith.maximumf %356, %363 : vector<8x256xf32>
    %365 = arith.mulf %356, %358 : vector<8x256xf32>
    %366 = arith.subf %364, %365 : vector<8x256xf32>
    %cst_111 = arith.constant 1.000000e+00 : f32
    %367 = vector.broadcast %cst_111 : f32 to vector<8x256xf32>
    %368 = arith.addf %367, %362 : vector<8x256xf32>
    %369 = math.log %368 : vector<8x256xf32>
    %370 = arith.addf %366, %369 : vector<8x256xf32>
    %c6_112 = arith.constant 6 : index
    %c0_113 = arith.constant 0 : index
    %c0_114 = arith.constant 0 : index
    %371 = vector.load %arg0[%c6_112, %c0_113, %c0_114] : memref<8x8x256xf32, #tpu.memory_space<vmem>>, vector<1x8x256xf32>
    %372 = vector.shape_cast %371 : vector<1x8x256xf32> to vector<8x256xf32>
    %c9_115 = arith.constant 9 : index
    %c0_116 = arith.constant 0 : index
    %c0_117 = arith.constant 0 : index
    %373 = vector.load %arg1[%c9_115, %c0_116, %c0_117] : memref<15x8x256xf32, #tpu.memory_space<vmem>>, vector<1x8x256xf32>
    %374 = vector.shape_cast %373 : vector<1x8x256xf32> to vector<8x256xf32>
    %375 = math.absf %372 : vector<8x256xf32>
    %cst_118 = arith.constant 0.000000e+00 : f32
    %376 = vector.broadcast %cst_118 : f32 to vector<8x256xf32>
    %377 = arith.subf %376, %375 : vector<8x256xf32>
    %378 = math.exp %377 : vector<8x256xf32>
    %cst_119 = arith.constant 0.000000e+00 : f32
    %379 = vector.broadcast %cst_119 : f32 to vector<8x256xf32>
    %380 = arith.maximumf %372, %379 : vector<8x256xf32>
    %381 = arith.mulf %372, %374 : vector<8x256xf32>
    %382 = arith.subf %380, %381 : vector<8x256xf32>
    %cst_120 = arith.constant 1.000000e+00 : f32
    %383 = vector.broadcast %cst_120 : f32 to vector<8x256xf32>
    %384 = arith.addf %383, %378 : vector<8x256xf32>
    %385 = math.log %384 : vector<8x256xf32>
    %386 = arith.addf %382, %385 : vector<8x256xf32>
    %387 = arith.addf %370, %386 : vector<8x256xf32>
    %c7_121 = arith.constant 7 : index
    %c0_122 = arith.constant 0 : index
    %c0_123 = arith.constant 0 : index
    %388 = vector.load %arg0[%c7_121, %c0_122, %c0_123] : memref<8x8x256xf32, #tpu.memory_space<vmem>>, vector<1x8x256xf32>
    %389 = vector.shape_cast %388 : vector<1x8x256xf32> to vector<8x256xf32>
    %c10_124 = arith.constant 10 : index
    %c0_125 = arith.constant 0 : index
    %c0_126 = arith.constant 0 : index
    %390 = vector.load %arg1[%c10_124, %c0_125, %c0_126] : memref<15x8x256xf32, #tpu.memory_space<vmem>>, vector<1x8x256xf32>
    %391 = vector.shape_cast %390 : vector<1x8x256xf32> to vector<8x256xf32>
    %392 = math.absf %389 : vector<8x256xf32>
    %cst_127 = arith.constant 0.000000e+00 : f32
    %393 = vector.broadcast %cst_127 : f32 to vector<8x256xf32>
    %394 = arith.subf %393, %392 : vector<8x256xf32>
    %395 = math.exp %394 : vector<8x256xf32>
    %cst_128 = arith.constant 0.000000e+00 : f32
    %396 = vector.broadcast %cst_128 : f32 to vector<8x256xf32>
    %397 = arith.maximumf %389, %396 : vector<8x256xf32>
    %398 = arith.mulf %389, %391 : vector<8x256xf32>
    %399 = arith.subf %397, %398 : vector<8x256xf32>
    %cst_129 = arith.constant 1.000000e+00 : f32
    %400 = vector.broadcast %cst_129 : f32 to vector<8x256xf32>
    %401 = arith.addf %400, %395 : vector<8x256xf32>
    %402 = math.log %401 : vector<8x256xf32>
    %403 = arith.addf %399, %402 : vector<8x256xf32>
    %404 = arith.addf %387, %403 : vector<8x256xf32>
    %cst_130 = arith.constant 5.000000e-01 : f32
    %405 = vector.broadcast %cst_130 : f32 to vector<8x256xf32>
    %406 = arith.mulf %289, %405 : vector<8x256xf32>
    %407 = arith.mulf %404, %406 : vector<8x256xf32>
    %408 = arith.addf %354, %407 : vector<8x256xf32>
    %409 = vector.shape_cast %408 : vector<8x256xf32> to vector<1x8x256xf32>
    %cst_131 = arith.constant dense<0.000000e+00> : vector<1xf32>
    %410 = vector.multi_reduction <add>, %409, %cst_131 [1, 2] : vector<1x8x256xf32> to vector<1xf32>
    %411 = vector.shape_cast %410 : vector<1xf32> to vector<1x1x1xf32>
    %412 = vector.extract %411[0, 0, 0] : f32 from vector<1x1x1xf32>
    %c0_132 = arith.constant 0 : index
    %c0_133 = arith.constant 0 : index
    %413 = memref.load %arg3[%c0_132, %c0_133] : memref<1x1xf32, #tpu.memory_space<smem>>
    memref.store %412, %arg3[%c0_132, %c0_133] : memref<1x1xf32, #tpu.memory_space<smem>>
    return
  }
}

</mosaic_0001>

<bundles_post_ra>
// kernel: _yolo_loss_device.1
= control target key start
LH: loop header
LB: loop body
LE: loop exit
PB: predicated region body
PF: predicated region fallthrough
CT: control target
= control target key end

     0   :  { %8 = vsyncpa [#allocation4], 0  ;;  %s1664_s0 = inlined_call_operand.vmem [shape: f32[8,8,256], index: 0, kind: input, shape index: {}]   ;;  %s1665_s1 = inlined_call_operand.vmem [shape: f32[15,8,256], index: 1, kind: input, shape index: {}]   ;;  %s1666_s2 = inlined_call_operand.vmem [shape: f32[40], index: 2, kind: input, shape index: {}]   ;;  %s1667_s3 = inlined_call_operand.hbm [shape: f32[1,1], index: 3, kind: output, shape index: {}]  }
   0x1   :  { %9 = vsyncpa [#allocation3], 0  ;;  %s20_s14 = sshll.u32 %s1666_s2, 4  ;;  %s21_s14 = int_to_ptr.vmem [resolvable:$true] %s20_s14 }
   0x2   :  { %s805_s15 = scalar_lea.vmem %s21_s14, 16  ;;  %p810_p1 = scmp.lt.s32.totalorder %s21_s14, %s21_s14 }
   0x3   :  { %p806_p0 = scmp.ne.s32.totalorder %s21_s14, %s805_s15  ;;  %p811_p2 = scmp.lt.s32.totalorder %s805_s15, %s805_s15 }
   0x5   :  { %p812_p3 = por %p811_p2, %p810_p1 }
   0x7   :  { %p813_p4 = pnand %p812_p3, %p806_p0 }
   0x9   :  { %816 = shalt.err (!%p813_p4)
}
   0xa   :  { %s829_s16 = smov [#allocation2]  }
   0xb   :  { %23 = dma.vmem_to_smem %s21_s14, 16, %s829_s16, [#allocation4]  }
   0xc   :  { %825 = dma.done.wait [#allocation4], 16  }
   0xd   :  { %826 = vsyncadd [#allocation4], 4294967280 }
   0xe   :  { %27 = sfence }
   0xf   :  { %v858_v0 = vld [vmem:[%s1664_s0] sm:$0xff]  ;;  %v863_v1 = vld [vmem:[%s1664_s0 + $0x8] sm:$0xff]  ;;  %v868_v2 = vld [vmem:[%s1664_s0 + $0x10] sm:$0xff]  ;;  %s897_s5 = sld [smem:[#allocation2 + $0x1]]  ;;  %v117_v38 = vlaneseq }
  0x10   :  { %1681 = vst [vmem:[#allocation8_spill] sm:$0xff] %v858_v0  ;;  %1682 = vst [vmem:[#allocation9_spill] sm:$0xff] %v863_v1  ;;  %v873_v3 = vld [vmem:[%s1664_s0 + $0x18] sm:$0xff]  ;;  %v33_v4 = vand.u32 2147483647, %v858_v0  ;;  %v882_v14 = vld [vmem:[%s1664_s0 + $0x20] sm:$0xff] }
  0x11   :  { %1683 = vst [vmem:[#allocation10_spill] sm:$0xff] %v868_v2  ;;  %1684 = vst [vmem:[#allocation11_spill] sm:$0xff] %v873_v3  ;;  %v34_v5 = vand.u32 2147483647, %v863_v1  ;;  %v41_v6 = vand.u32 2147483647, %v868_v2 }
  0x12   :  { %v42_v7 = vand.u32 2147483647, %v873_v3  ;;  %v35_v8 = vsub.f32 0.0, %v33_v4  ;;  %1685 = vst [vmem:[#allocation12_spill] sm:$0xff] %v882_v14  ;;  %v887_v17 = vld [vmem:[%s1664_s0 + $0x28] sm:$0xff]  ;;  %v659_v18 = vld [vmem:[%s1664_s0 + $0x30] sm:$0xff] }
  0x13   :  { %v36_v9 = vsub.f32 0.0, %v34_v5  ;;  %v43_v10 = vsub.f32 0.0, %v41_v6  ;;  %1686 = vst [vmem:[#allocation13_spill] sm:$0xff] %v887_v17  ;;  %v72_v19 = vmul.f32 1.442695, %v882_v14  ;;  %v660_v20 = vld [vmem:[%s1664_s0 + $0x38] sm:$0xff] }
  0x14   :  { %v44_v11 = vsub.f32 0.0, %v42_v7  ;;  %v37_v12 = vmul.f32 1.442695, %v35_v8  ;;  %v74_v21 = vmul.f32 1.442695, %v887_v17  ;;  %s899_s6 = sld [smem:[#allocation2]] }
  0x15   :  { %v39_v13 = vmul.f32 1.442695, %v36_v9  ;;  %v45_v15 = vmul.f32 1.442695, %v43_v10  ;;  %v84_v22 = vmul.f32 1.442695, %v659_v18  ;;  %v123_v46 = vstv %s897_s5 }
  0x16   :  { %v47_v16 = vmul.f32 1.442695, %v44_v11  ;;  %739 = vpow2.f32 %v37_v12  ;;  %v86_v23 = vmul.f32 1.442695, %v660_v20  ;;  %s901_s7 = sld [smem:[#allocation2 + $0x3]]  ;;  %v908_v24 = vld [vmem:[%s1664_s0 + $0x40] sm:$0xff] }
  0x17   :  { %741 = vpow2.f32 %v39_v13  ;;  %s903_s8 = sld [smem:[#allocation2 + $0x2]]  ;;  %v915_v25 = vld [vmem:[%s1664_s0 + $0x48] sm:$0xff]  ;;  %v444_v26 = vand.u32 2147483647, %v908_v24  ;;  %v657_v40 = vld [vmem:[%s1665_s1 + $0xd0] sm:$0xff]  ;;  %vm49_vm0 = vcmp.ge.f32.partialorder %v858_v0, 0.0 }
  0x18   :  { %743 = vpow2.f32 %v45_v15  ;;  %s910_s11 = sld [smem:[#allocation2 + $0x4]]  ;;  %1687 = vst [vmem:[#allocation14_spill] sm:$0xff] %v915_v25  ;;  %v445_v27 = vand.u32 2147483647, %v915_v25  ;;  %vm50_vm1 = vcmp.ge.f32.partialorder %v863_v1, 0.0  ;;  %vm59_vm2 = vcmp.ge.f32.partialorder %v868_v2, 0.0 }
  0x19   :  { %745 = vpow2.f32 %v47_v16  ;;  %s917_s14 = sld [smem:[#allocation2 + $0x6]]  ;;  %v446_v31 = vsub.f32 0.0, %v444_v26  ;;  %vm60_vm3 = vcmp.ge.f32.partialorder %v873_v3, 0.0  ;;  %v661_v45 = vld [vmem:[%s1665_s1 + $0xe0] sm:$0xff]  ;;  %v658_v48 = vld [vmem:[%s1665_s1 + $0xd8] sm:$0xff]  ;;  %v662_v50 = vld [vmem:[%s1665_s1 + $0xe8] sm:$0xff] }
  0x1a   :  { %747 = vpow2.f32 %v72_v19  ;;  %s919_s15 = sld [smem:[#allocation2 + $0x5]]  ;;  %v447_v34 = vsub.f32 0.0, %v445_v27  ;;  %v972_v51 = vshrl.u32 %v117_v38, 7  ;;  %v127_v52 = vstv %s899_s6 }
  0x1b   :  { %749 = vpow2.f32 %v74_v21  ;;  %s922_s16 = sld [smem:[#allocation2 + $0x8]]  ;;  %v448_v41 = vmul.f32 1.442695, %v446_v31 }
  0x1c   :  { %751 = vpow2.f32 %v84_v22  ;;  %s925_s17 = sld [smem:[#allocation2 + $0x7]]  ;;  %v450_v43 = vmul.f32 1.442695, %v447_v34  ;;  %v135_v53 = vstv %s901_s7  ;;  %v664_v34 = vld [vmem:[%s1665_s1 + $0xb8] sm:$0xff]  ;;  %vm120_vm4 = vcmp.lt.s32.totalorder %v972_v51, 3 }
  0x1d   :  { %753 = vpow2.f32 %v86_v23  ;;  %s927_s18 = sld [smem:[#allocation2 + $0x9]]  ;;  %v139_v54 = vstv %s903_s8  ;;  %v663_v23 = vld [vmem:[%s1665_s1 + $0xb0] sm:$0xff]  ;;  %vm272_vm15 = vcmp.ge.s32.totalorder %v972_v51, 3 }
  0x1e   :  { %s931_s19 = sld [smem:[#allocation2 + $0xb]]  ;;  %v151_v55 = vstv %s910_s11 }
  0x1f   :  { %s935_s2 = sld [smem:[#allocation2 + $0xa]]  ;;  %v159_v56 = vstv %s917_s14 }
  0x20   :  { %s940_s20 = sld [smem:[#allocation2 + $0xd]]  ;;  %v163_v58 = vstv %s919_s15 }
  0x21   :  { %s945_s21 = sld [smem:[#allocation2 + $0xc]]  ;;  %v171_v59 = vstv %s922_s16 }
  0x22   :  { %s951_s24 = sld [smem:[#allocation2 + $0xe]]  ;;  %v175_v63 = vstv %s925_s17 }
  0x23   :  { %v740_v28 = vpop.eup %739  ;;  %s955_s25 = sld [smem:[#allocation2 + $0x10]]  ;;  %v187_v7 = vstv %s927_s18 }
  0x24   :  { %v742_v29 = vpop.eup %741  ;;  %v929_v30 = vadd.f32 1.0, %v740_v28  ;;  %s964_s28 = sld [smem:[#allocation2 + $0xf]]  ;;  %v51_v60 = vsel %vm49_vm0, 1.0, %v740_v28  ;;  %v197_v11 = vstv %s931_s19  ;;  %vm273_vm0 = vcmp.lt.s32.totalorder %v972_v51, 6 }
  0x25   :  { %v744_v32 = vpop.eup %743  ;;  %v933_v33 = vadd.f32 1.0, %v742_v29  ;;  %s976_s10 = sld [smem:[#allocation2 + $0x13]]  ;;  %v52_v4 = vsel %vm50_vm1, 1.0, %v742_v29  ;;  %v201_v12 = vstv %s935_s2 }
  0x26   :  { %v746_v35 = vpop.eup %745  ;;  %755 = vrcp.f32 %v929_v30  ;;  %v938_v36 = vadd.f32 1.0, %v744_v32  ;;  %s981_s12 = sld [smem:[#allocation2 + $0x12]]  ;;  %v61_v8 = vsel %vm59_vm2, 1.0, %v744_v32  ;;  %v209_v13 = vstv %s940_s20 }
  0x27   :  { %757 = vrcp.f32 %v933_v33  ;;  %v943_v37 = vadd.f32 1.0, %v746_v35  ;;  %v748_v39 = vpop.eup %747  ;;  %s985_s13 = sld [smem:[#allocation2 + $0x11]]  ;;  %v62_v9 = vsel %vm60_vm3, 1.0, %v746_v35  ;;  %v213_v15 = vstv %s945_s21 }
  0x28   :  { %759 = vrcp.f32 %v938_v36  ;;  %v750_v42 = vpop.eup %749  ;;  %v79_v49 = vmul.f32 %v748_v39, %v657_v40  ;;  %s990_s11 = sld [smem:[#allocation2 + $0x15]]  ;;  %v225_v16 = vstv %s951_s24 }
  0x29   :  { %761 = vrcp.f32 %v943_v37  ;;  %v752_v44 = vpop.eup %751  ;;  %v80_v61 = vmul.f32 %v750_v42, %v658_v48  ;;  %s997_s22 = sld [smem:[#allocation2 + $0x14]]  ;;  %v235_v21 = vstv %s955_s25  ;;  %v665_v42 = vld [vmem:[%s1665_s1 + $0xc0] sm:$0xff] }
  0x2a   :  { %v754_v47 = vpop.eup %753  ;;  %763 = vpow2.f32 %v448_v41  ;;  %v91_v57 = vmul.f32 %v752_v44, %v661_v45  ;;  %v103_v5 = vmul.f32 0.5, %v79_v49  ;;  %s1006_s23 = sld [smem:[#allocation2 + $0x17]]  ;;  %v239_v28 = vstv %s964_s28 }
  0x2b   :  { %765 = vpow2.f32 %v450_v43  ;;  %v92_v62 = vmul.f32 %v754_v47, %v662_v50  ;;  %v104_v18 = vmul.f32 0.5, %v80_v61  ;;  %v263_v29 = vstv %s976_s10  ;;  %v666_v50 = vld [vmem:[%s1665_s1 + $0xc8] sm:$0xff]  ;;  %s1071_s26 = sld [smem:[#allocation2 + $0x18]] }
  0x2c   :  { %v994_v6 = vmul.f32 %v91_v57, %v79_v49  ;;  %v109_v19 = vmul.f32 0.5, %v91_v57  ;;  %v247_v39 = vstv %s981_s12  ;;  %s1105_s24 = sld [smem:[#allocation2 + $0x16]]  ;;  %767 = vlog2.f32 %v929_v30 }
  0x2d   :  { %v1003_v10 = vmul.f32 %v92_v62, %v80_v61  ;;  %v110_v20 = vmul.f32 0.5, %v92_v62  ;;  %s1116_s5 = sld [smem:[#allocation2 + $0x1a]]  ;;  %769 = vlog2.f32 %v933_v33  ;;  %v1492_v33 = vld [vmem:[%s1664_s0 + $0x70] sm:$0xff] }
  0x2e   :  { %v1017_v26 = vadd.f32 %v151_v55, %v994_v6  ;;  %v1020_v27 = vadd.f32 %v187_v7, %v994_v6  ;;  %v1031_v38 = vadd.f32 %v225_v16, %v994_v6  ;;  %s1129_s7 = sld [smem:[#allocation2 + $0x19]]  ;;  %v1690_v17 = vstv %s990_s11 }
  0x2f   :  { %v1028_v35 = vadd.f32 %v151_v55, %v1003_v10  ;;  %v1038_v43 = vadd.f32 %v187_v7, %v1003_v10  ;;  %v1041_v44 = vadd.f32 %v225_v16, %v1003_v10  ;;  %v1048_v55 = vadd.f32 %v263_v29, %v994_v6  ;;  %s1151_s8 = sld [smem:[#allocation2 + $0x1c]] }
  0x30   :  { %v1051_v57 = vadd.f32 %v263_v29, %v1003_v10  ;;  %s1159_s14 = sld [smem:[#allocation2 + $0x1b]]  ;;  %v1691_v25 = vmov %v1690_v17 }
  0x31   :  { %s1234_s15 = sld [smem:[#allocation2 + $0x1d]] }
  0x32   :  { %s1236_s16 = sld [smem:[#allocation2 + $0x1f]] }
  0x33   :  { %v756_v22 = vpop.eup %755  ;;  %s1240_s17 = sld [smem:[#allocation2 + $0x1e]] }
  0x34   :  { %v758_v31 = vpop.eup %757  ;;  %v56_v32 = vmul.f32 %v756_v22, %v51_v60  ;;  %v1056_v60 = vld [vmem:[%s1664_s0 + $0x50] sm:$0xff]  ;;  %s1243_s19 = sld [smem:[#allocation2 + $0x21]] }
  0x35   :  { %v760_v40 = vpop.eup %759  ;;  %v58_v41 = vmul.f32 %v758_v31, %v52_v4  ;;  %s1247_s2 = sld [smem:[#allocation2 + $0x20]] }
  0x36   :  { %v762_v47 = vpop.eup %761  ;;  %v66_v48 = vmul.f32 %v760_v40, %v61_v8  ;;  %v96_v49 = vadd.f32 %v663_v23, %v56_v32  ;;  %s1283_s20 = sld [smem:[#allocation2 + $0x24]] }
  0x37   :  { %v68_v61 = vmul.f32 %v762_v47, %v62_v9  ;;  %v97_v62 = vadd.f32 %v664_v34, %v58_v41  ;;  %v1065_v29 = vpop.eup %763  ;;  %s1306_s21 = sld [smem:[#allocation2 + $0x23]] }
  0x38   :  { %v101_v8 = vadd.f32 %v665_v42, %v66_v48  ;;  %v1060_v16 = vsub.f32 %v96_v49, %v103_v5  ;;  %v1062_v22 = vadd.f32 %v103_v5, %v96_v49  ;;  %v1074_v40 = vpop.eup %765  ;;  %s1311_s25 = sld [smem:[#allocation2 + $0x26]] }
  0x39   :  { %v102_v31 = vadd.f32 %v666_v50, %v68_v61  ;;  %v1067_v32 = vsub.f32 %v97_v62, %v104_v18  ;;  %v1069_v9 = vadd.f32 %v104_v18, %v97_v62  ;;  %s1318_s28 = sld [smem:[#allocation2 + $0x25]] }
  0x3a   :  { %v1076_v5 = vsub.f32 %v101_v8, %v109_v19  ;;  %v1078_v41 = vadd.f32 %v109_v19, %v101_v8  ;;  %v124_v42 = vmin.f32 %v123_v46, %v1062_v22  ;;  %v128_v18 = vmax.f32 %v127_v52, %v1060_v16  ;;  %s1351_s12 = sld [smem:[#allocation2 + $0x22]] }
  0x3b   :  { %v1086_v47 = vsub.f32 %v102_v31, %v110_v20  ;;  %v1088_v48 = vadd.f32 %v110_v20, %v102_v31  ;;  %v125_v49 = vmin.f32 %v123_v46, %v1069_v9  ;;  %v129_v50 = vmax.f32 %v127_v52, %v1067_v32 }
  0x3c   :  { %v130_v19 = vsub.f32 %v124_v42, %v128_v18  ;;  %v136_v61 = vmin.f32 %v135_v53, %v1078_v41  ;;  %v140_v62 = vmax.f32 %v139_v54, %v1076_v5  ;;  %v160_v20 = vmin.f32 %v159_v56, %v1062_v22  ;;  %v1121_v42 = vld [vmem:[%s1664_s0 + $0x58] sm:$0xff] }
  0x3d   :  { %v131_v8 = vsub.f32 %v125_v49, %v129_v50  ;;  %v137_v46 = vmin.f32 %v135_v53, %v1088_v48  ;;  %v141_v52 = vmax.f32 %v139_v54, %v1086_v47  ;;  %v161_v31 = vmin.f32 %v159_v56, %v1069_v9 }
  0x3e   :  { %v132_v18 = vmax.f32 %v130_v19, 0.0  ;;  %v142_v49 = vsub.f32 %v136_v61, %v140_v62  ;;  %v164_v53 = vmax.f32 %v163_v58, %v1060_v16  ;;  %v165_v54 = vmax.f32 %v163_v58, %v1067_v32 }
  0x3f   :  { %v133_v56 = vmax.f32 %v131_v8, 0.0  ;;  %v143_v50 = vsub.f32 %v137_v46, %v141_v52  ;;  %v172_v34 = vmin.f32 %v171_v59, %v1078_v41  ;;  %v173_v23 = vmin.f32 %v171_v59, %v1088_v48 }
  0x40   :  { %v144_v19 = vmax.f32 %v142_v49, 0.0  ;;  %v166_v61 = vsub.f32 %v160_v20, %v164_v53  ;;  %v176_v62 = vmax.f32 %v175_v63, %v1076_v5  ;;  %v177_v8 = vmax.f32 %v175_v63, %v1086_v47 }
  0x41   :  { %v145_v7 = vmax.f32 %v143_v50, 0.0  ;;  %v198_v46 = vmin.f32 %v197_v11, %v1062_v22  ;;  %v1668_v52 = vstv %s1071_s26  ;;  %v167_v49 = vsub.f32 %v161_v31, %v165_v54 }
  0x42   :  { %v146_v59 = vmul.f32 %v144_v19, %v132_v18  ;;  %v178_v20 = vsub.f32 %v172_v34, %v176_v62  ;;  %v199_v53 = vmin.f32 %v197_v11, %v1069_v9  ;;  %v179_v63 = vsub.f32 %v173_v23, %v177_v8 }
  0x43   :  { %v147_v50 = vmul.f32 %v145_v7, %v133_v56  ;;  %v202_v58 = vmax.f32 %v201_v12, %v1060_v16  ;;  %v203_v18 = vmax.f32 %v201_v12, %v1067_v32  ;;  %v168_v31 = vmax.f32 %v166_v61, 0.0 }
  0x44   :  { %v180_v34 = vmax.f32 %v178_v20, 0.0  ;;  %v210_v11 = vmin.f32 %v209_v13, %v1078_v41  ;;  %v211_v54 = vmin.f32 %v209_v13, %v1088_v48  ;;  %v292_v56 = vstv %s1105_s24 }
  0x45   :  { %v204_v7 = vsub.f32 %v198_v46, %v202_v58  ;;  %v1171_v23 = vadd.f32 %v1668_v52, %v994_v6  ;;  %v314_v12 = vstv %s1116_s5  ;;  %v205_v19 = vsub.f32 %v199_v53, %v203_v18 }
  0x46   :  { %v214_v61 = vmax.f32 %v213_v15, %v1076_v5  ;;  %v215_v62 = vmax.f32 %v213_v15, %v1086_v47  ;;  %v1181_v13 = vmul.f32 3.0, %v146_v59  ;;  %v1183_v58 = vmul.f32 3.0, %v147_v50 }
  0x47   :  { %v169_v46 = vmax.f32 %v167_v49, 0.0  ;;  %v181_v20 = vmax.f32 %v179_v63, 0.0  ;;  %v182_v52 = vmul.f32 %v180_v34, %v168_v31  ;;  %v236_v18 = vmin.f32 %v235_v21, %v1062_v22 }
  0x48   :  { %v216_v4 = vsub.f32 %v210_v11, %v214_v61  ;;  %v217_v53 = vsub.f32 %v211_v54, %v215_v62  ;;  %v206_v45 = vmax.f32 %v204_v7, 0.0  ;;  %v237_v15 = vmin.f32 %v235_v21, %v1069_v9 }
  0x49   :  { %v240_v59 = vmax.f32 %v239_v28, %v1060_v16  ;;  %v241_v49 = vmax.f32 %v239_v28, %v1067_v32  ;;  %v207_v50 = vmax.f32 %v205_v19, 0.0  ;;  %v248_v34 = vmin.f32 %v247_v39, %v1078_v41 }
  0x4a   :  { %v218_v63 = vmax.f32 %v216_v4, 0.0  ;;  %v219_v31 = vmax.f32 %v217_v53, 0.0  ;;  %vm154_vm5 = vcmp.gt.f32.partialorder %v1181_v13, %v1017_v26  ;;  %v249_v21 = vmin.f32 %v247_v39, %v1088_v48 }
  0x4b   :  { %v326_v11 = vstv %s1151_s8  ;;  %v330_v28 = vstv %s1159_s14  ;;  %vm155_vm6 = vcmp.gt.f32.partialorder %v1183_v58, %v1028_v35  ;;  %v242_v4 = vsub.f32 %v236_v18, %v240_v59  ;;  %vm1262_vm8 = vmand %vm154_vm5, %vm120_vm4 }
  0x4c   :  { %v243_v54 = vsub.f32 %v237_v15, %v241_v49  ;;  %v1688_v7 = vstv %s985_s13  ;;  %v183_v53 = vmul.f32 %v181_v20, %v169_v46  ;;  %v184_v8 = vmul.f32 3.0, %v182_v52  ;;  %vm1277_vm10 = vmand %vm155_vm6, %vm120_vm4  ;;  %s1410_s13 = sld [smem:[#allocation2 + $0x27]] }
  0x4d   :  { %v252_v19 = vmax.f32 %v1688_v7, %v1076_v5  ;;  %v1689_v61 = vmov %v1688_v7  ;;  %v220_v39 = vmul.f32 %v218_v63, %v206_v45  ;;  %v277_v14 = vmin.f32 %v1690_v17, %v1062_v22 }
  0x4e   :  { %v253_v62 = vmax.f32 %v1689_v61, %v1086_v47  ;;  %v221_v3 = vmul.f32 %v219_v31, %v207_v50  ;;  %v278_v0 = vmin.f32 %v1691_v25, %v1069_v9  ;;  %v1692_v18 = vstv %s997_s22 }
  0x4f   :  { %v254_v2 = vsub.f32 %v248_v34, %v252_v19  ;;  %v281_v15 = vmax.f32 %v1692_v18, %v1060_v16  ;;  %v1693_v59 = vmov %v1692_v18  ;;  %v1694_v7 = vstv %s1006_s23 }
  0x50   :  { %v255_v1 = vsub.f32 %v249_v21, %v253_v62  ;;  %v282_v49 = vmax.f32 %v1693_v59, %v1067_v32  ;;  %v289_v46 = vmin.f32 %v1694_v7, %v1078_v41  ;;  %v1695_v45 = vmov %v1694_v7 }
  0x51   :  { %v290_v52 = vmin.f32 %v1695_v45, %v1088_v48  ;;  %v244_v17 = vmax.f32 %v242_v4, 0.0  ;;  %v245_v20 = vmax.f32 %v243_v54, 0.0  ;;  %v256_v50 = vmax.f32 %v254_v2, 0.0 }
  0x52   :  { %v257_v63 = vmax.f32 %v255_v1, 0.0  ;;  %v185_v25 = vmul.f32 3.0, %v183_v53  ;;  %v283_v31 = vsub.f32 %v277_v14, %v281_v15  ;;  %v293_v34 = vmax.f32 %v292_v56, %v1076_v5 }
  0x53   :  { %v294_v21 = vmax.f32 %v292_v56, %v1086_v47  ;;  %vm190_vm7 = vcmp.gt.f32.partialorder %v184_v8, %v1020_v27  ;;  %v222_v19 = vmul.f32 3.0, %v220_v39  ;;  %v223_v61 = vmul.f32 3.0, %v221_v3 }
  0x54   :  { %v284_v4 = vsub.f32 %v278_v0, %v282_v49  ;;  %v295_v1 = vsub.f32 %v289_v46, %v293_v34  ;;  %v315_v14 = vmin.f32 %v314_v12, %v1062_v22  ;;  %v316_v54 = vmin.f32 %v314_v12, %v1069_v9  ;;  %vm1289_vm11 = vmand %vm190_vm7, %vm120_vm4  ;;  %v1477_v12 = vld [vmem:[%s1664_s0 + $0x60] sm:$0xff] }
  0x55   :  { %v296_v2 = vsub.f32 %v290_v52, %v294_v21  ;;  %v258_v62 = vmul.f32 %v256_v50, %v244_v17  ;;  %v259_v56 = vmul.f32 %v257_v63, %v245_v20  ;;  %v1696_v53 = vstv %s1129_s7  ;;  %vm194_vm1 = vmor %vm1262_vm8, %vm1289_vm11 }
  0x56   :  { %v319_v18 = vmax.f32 %v1696_v53, %v1060_v16  ;;  %v1697_v39 = vmov %v1696_v53  ;;  %v285_v0 = vmax.f32 %v283_v31, 0.0  ;;  %v297_v15 = vmax.f32 %v295_v1, 0.0 }
  0x57   :  { %v320_v3 = vmax.f32 %v1697_v39, %v1067_v32  ;;  %v327_v59 = vmin.f32 %v326_v11, %v1078_v41  ;;  %v328_v49 = vmin.f32 %v326_v11, %v1088_v48  ;;  %vm191_vm9 = vcmp.gt.f32.partialorder %v185_v25, %v1038_v43 }
  0x58   :  { %v286_v7 = vmax.f32 %v284_v4, 0.0  ;;  %v298_v46 = vmax.f32 %v296_v2, 0.0  ;;  %v1700_v45 = vstv %s1071_s26  ;;  %v321_v13 = vsub.f32 %v315_v14, %v319_v18  ;;  %vm1300_vm14 = vmand %vm191_vm9, %vm120_vm4 }
  0x59   :  { %v1270_v52 = vadd.f32 %v1700_v45, %v1003_v10  ;;  %v322_v11 = vsub.f32 %v316_v54, %v320_v3  ;;  %v331_v17 = vmax.f32 %v330_v28, %v1076_v5  ;;  %v332_v20 = vmax.f32 %v330_v28, %v1086_v47  ;;  %vm195_vm2 = vmor %vm1277_vm10, %vm1300_vm14 }
  0x5a   :  { %vm228_vm12 = vcmp.gt.f32.partialorder %v222_v19, %v1031_v38  ;;  %vm229_vm13 = vcmp.gt.f32.partialorder %v223_v61, %v1041_v44  ;;  %v260_v58 = vmul.f32 3.0, %v258_v62  ;;  %v342_v50 = vstv %s1234_s15 }
  0x5b   :  { %v261_v27 = vmul.f32 3.0, %v259_v56  ;;  %v299_v8 = vmul.f32 %v297_v15, %v285_v0  ;;  %v333_v63 = vsub.f32 %v327_v59, %v331_v17  ;;  %v334_v31 = vsub.f32 %v328_v49, %v332_v20  ;;  %vm1332_vm3 = vmand %vm228_vm12, %vm120_vm4 }
  0x5c   :  { %v300_v34 = vmul.f32 %v298_v46, %v286_v7  ;;  %v352_v21 = vstv %s1236_s16  ;;  %v356_v4 = vstv %s1240_s17  ;;  %v364_v1 = vstv %s1243_s19  ;;  %vm1342_vm5 = vmand %vm229_vm13, %vm120_vm4 }
  0x5d   :  { %v323_v43 = vmax.f32 %v321_v13, 0.0  ;;  %v324_v25 = vmax.f32 %v322_v11, 0.0  ;;  %v335_v2 = vmax.f32 %v333_v63, 0.0  ;;  %v368_v14 = vstv %s1247_s2  ;;  %vm1361_vm9 = vmor %vm194_vm1, %vm1332_vm3 }
  0x5e   :  { %v353_v54 = vmin.f32 %v352_v21, %v1062_v22  ;;  %v354_v62 = vmin.f32 %v352_v21, %v1069_v9  ;;  %v357_v56 = vmax.f32 %v356_v4, %v1060_v16  ;;  %v358_v53 = vmax.f32 %v356_v4, %v1067_v32  ;;  %vm1372_vm12 = vmor %vm195_vm2, %vm1342_vm5 }
  0x5f   :  { %v301_v39 = vmul.f32 3.0, %v299_v8  ;;  %v336_v3 = vmax.f32 %v334_v31, 0.0  ;;  %v365_v0 = vmin.f32 %v364_v1, %v1078_v41  ;;  %v366_v15 = vmin.f32 %v364_v1, %v1088_v48  ;;  %vm1403_vm13 = vmand %vm272_vm15, %vm273_vm0 }
  0x60   :  { %v359_v49 = vsub.f32 %v353_v54, %v357_v56  ;;  %v360_v38 = vsub.f32 %v354_v62, %v358_v53  ;;  %v369_v19 = vmax.f32 %v368_v14, %v1076_v5  ;;  %v370_v7 = vmax.f32 %v368_v14, %v1086_v47 }
  0x61   :  { %vm266_vm6 = vcmp.gt.f32.partialorder %v260_v58, %v1048_v55  ;;  %vm267_vm7 = vcmp.gt.f32.partialorder %v261_v27, %v1051_v57  ;;  %v343_v46 = vadd.f32 %v342_v50, %v994_v6  ;;  %v390_v45 = vstv %s1283_s20 }
  0x62   :  { %v302_v61 = vmul.f32 3.0, %v300_v34  ;;  %v337_v13 = vmul.f32 %v335_v2, %v323_v43  ;;  %v371_v11 = vsub.f32 %v365_v0, %v369_v19  ;;  %v372_v17 = vsub.f32 %v366_v15, %v370_v7  ;;  %vm1382_vm11 = vmand %vm266_vm6, %vm120_vm4 }
  0x63   :  { %vm307_vm8 = vcmp.gt.f32.partialorder %v301_v39, %v1171_v23  ;;  %v338_v20 = vmul.f32 %v336_v3, %v324_v25  ;;  %v344_v35 = vadd.f32 %v342_v50, %v1003_v10  ;;  %v361_v8 = vmax.f32 %v359_v49, 0.0  ;;  %vm1392_vm10 = vmand %vm267_vm7, %vm120_vm4 }
  0x64   :  { %v362_v26 = vmax.f32 %v360_v38, 0.0  ;;  %v373_v28 = vmax.f32 %v371_v11, 0.0  ;;  %v391_v31 = vmin.f32 %v390_v45, %v1062_v22  ;;  %v392_v34 = vmin.f32 %v390_v45, %v1069_v9  ;;  %vm270_vm4 = vmor %vm1361_vm9, %vm1382_vm11  ;;  %v471_v22 = vld [vmem:[%s1665_s1] sm:$0xff] }
  0x65   :  { %v374_v21 = vmax.f32 %v372_v17, 0.0  ;;  %v394_v55 = vstv %s1306_s21  ;;  %v402_v58 = vstv %s1311_s25  ;;  %v406_v4 = vstv %s1318_s28  ;;  %vm271_vm15 = vmor %vm1372_vm12, %vm1392_vm10 }
  0x66   :  { %vm308_vm14 = vcmp.gt.f32.partialorder %v302_v61, %v1270_v52  ;;  %v339_v9 = vmul.f32 3.0, %v337_v13  ;;  %v395_v57 = vmax.f32 %v394_v55, %v1060_v16  ;;  %v396_v27 = vmax.f32 %v394_v55, %v1067_v32  ;;  %vm309_vm0 = vmand %vm307_vm8, %vm1403_vm13  ;;  %v714_v52 = vld [vmem:[%s1665_s1 + $0x10] sm:$0xff] }
  0x67   :  { %v403_v51 = vmin.f32 %v402_v58, %v1078_v41  ;;  %v404_v1 = vmin.f32 %v402_v58, %v1088_v48  ;;  %v407_v43 = vmax.f32 %v406_v4, %v1076_v5  ;;  %v408_v25 = vmax.f32 %v406_v4, %v1086_v47  ;;  %vm310_vm1 = vmand %vm308_vm14, %vm1403_vm13 }
  0x68   :  { %v340_v16 = vmul.f32 3.0, %v338_v20  ;;  %v375_v32 = vmul.f32 %v373_v28, %v361_v8  ;;  %v397_v2 = vsub.f32 %v391_v31, %v395_v57  ;;  %v398_v14 = vsub.f32 %v392_v34, %v396_v27  ;;  %vm1442_vm3 = vmor %vm270_vm4, %vm309_vm0  ;;  %v1482_v20 = vld [vmem:[%s1664_s0 + $0x68] sm:$0xff]  ;;  %v1502_v8 = vld [vmem:[%s1664_s0 + $0x78] sm:$0xff] }
  0x69   :  { %v376_v41 = vmul.f32 %v374_v21, %v362_v26  ;;  %v380_v48 = vstv %s1351_s12  ;;  %v409_v54 = vsub.f32 %v403_v51, %v407_v43  ;;  %v410_v5 = vsub.f32 %v404_v1, %v408_v25  ;;  %vm1452_vm6 = vmor %vm271_vm15, %vm310_vm1  ;;  %v1548_v27 = vld [vmem:[%s1665_s1 + $0x40] sm:$0xff]  ;;  %v768_v1 = vpop.eup %767 }
  0x6a   :  { %v399_v47 = vmax.f32 %v397_v2, 0.0  ;;  %v400_v62 = vmax.f32 %v398_v14, 0.0  ;;  %v1721_v56 = vand.u32 2147483647, %v1056_v60  ;;  %vm345_vm2 = vcmp.gt.f32.partialorder %v339_v9, %v343_v46  ;;  %v770_v43 = vpop.eup %769 }
  0x6b   :  { %v411_v18 = vmax.f32 %v409_v54, 0.0  ;;  %v412_v3 = vmax.f32 %v410_v5, 0.0  ;;  %v1722_v23 = vand.u32 2147483647, %v1121_v42  ;;  %vm346_vm5 = vcmp.gt.f32.partialorder %v340_v16, %v344_v35  ;;  %vm1459_vm7 = vmand %vm345_vm2, %vm1403_vm13  ;;  %v708_v54 = vld [vmem:[%s1665_s1 + $0x50] sm:$0xff] }
  0x6c   :  { %v541_v53 = vsub.f32 0.0, %v1721_v56  ;;  %v377_v0 = vmul.f32 3.0, %v375_v32  ;;  %v381_v15 = vadd.f32 %v380_v48, %v994_v6  ;;  %v378_v49 = vmul.f32 3.0, %v376_v41  ;;  %vm1466_vm9 = vmand %vm346_vm5, %vm1403_vm13  ;;  %v1739_v32 = vld [vmem:[#allocation8_spill] sm:$0xff]  ;;  %v1740_v5 = vld [vmem:[#allocation14_spill] sm:$0xff] }
  0x6d   :  { %v542_v39 = vsub.f32 0.0, %v1722_v23  ;;  %v382_v38 = vadd.f32 %v380_v48, %v1003_v10  ;;  %v413_v19 = vmul.f32 %v411_v18, %v399_v47  ;;  %v414_v46 = vmul.f32 %v412_v3, %v400_v62  ;;  %vm349_vm8 = vmor %vm1442_vm3, %vm1459_vm7  ;;  %v472_v56 = vld [vmem:[%s1665_s1 + $0x8] sm:$0xff]  ;;  %v709_v3 = vld [vmem:[%s1665_s1 + $0x58] sm:$0xff] }
  0x6e   :  { %v418_v45 = vstv %s1410_s13  ;;  %v458_v61 = vadd.f32 1.0, %v1065_v29  ;;  %v543_v13 = vmul.f32 1.442695, %v541_v53  ;;  %vm383_vm12 = vcmp.gt.f32.partialorder %v377_v0, %v381_v15  ;;  %vm350_vm10 = vmor %vm1452_vm6, %vm1466_vm9  ;;  %v715_v0 = vld [vmem:[%s1665_s1 + $0x18] sm:$0xff]  ;;  %s831_s13 = smov [#allocation5]  }
  0x6f   :  { %v545_v11 = vmul.f32 1.442695, %v542_v39  ;;  %v459_v17 = vadd.f32 1.0, %v1074_v40  ;;  %vm384_vm11 = vcmp.gt.f32.partialorder %v378_v49, %v382_v38  ;;  %v415_v30 = vmul.f32 3.0, %v413_v19  ;;  %vm385_vm14 = vmand %vm383_vm12, %vm1403_vm13  ;;  %v1741_v38 = vld [vmem:[#allocation9_spill] sm:$0xff] }
  0x70   :  { %v419_v29 = vadd.f32 %v418_v45, %v994_v6  ;;  %771 = vpow2.f32 %v543_v13  ;;  %v416_v40 = vmul.f32 3.0, %v414_v46  ;;  %v420_v35 = vadd.f32 %v418_v45, %v1003_v10  ;;  %vm386_vm4 = vmand %vm384_vm11, %vm1403_vm13  ;;  %v1742_v46 = vld [vmem:[#allocation10_spill] sm:$0xff] }
  0x71   :  { %773 = vpow2.f32 %v545_v11  ;;  %v567_v6 = vand.u32 2147483647, %v1477_v12  ;;  %v568_v63 = vand.u32 2147483647, %v1482_v20  ;;  %v597_v10 = vand.u32 2147483647, %v1492_v33  ;;  %vm1518_vm0 = vmor %vm349_vm8, %vm385_vm14 }
  0x72   :  { %775 = vlog2.f32 %v458_v61  ;;  %vm421_vm15 = vcmp.gt.f32.partialorder %v415_v30, %v419_v29  ;;  %v598_v31 = vand.u32 2147483647, %v1502_v8  ;;  %vm422_vm1 = vcmp.gt.f32.partialorder %v416_v40, %v420_v35  ;;  %vm1527_vm2 = vmor %vm350_vm10, %vm386_vm4 }
  0x73   :  { %777 = vlog2.f32 %v459_v17  ;;  %v569_v26 = vsub.f32 0.0, %v567_v6  ;;  %v570_v28 = vsub.f32 0.0, %v568_v63  ;;  %v599_v58 = vsub.f32 0.0, %v597_v10  ;;  %vm1534_vm3 = vmand %vm421_vm15, %vm1403_vm13  ;;  %v1743_v17 = vld [vmem:[#allocation11_spill] sm:$0xff] }
  0x74   :  { %779 = vlog2.f32 %v938_v36  ;;  %v600_v9 = vsub.f32 0.0, %v598_v31  ;;  %vm1541_vm5 = vmand %vm422_vm1, %vm1403_vm13  ;;  %v452_v25 = vmax.f32 %v908_v24, 0.0  ;;  %v454_v16 = vmul.f32 %v908_v24, %v1548_v27 }
  0x75   :  { %v571_v21 = vmul.f32 1.442695, %v569_v26  ;;  %v573_v55 = vmul.f32 1.442695, %v570_v28  ;;  %781 = vlog2.f32 %v943_v37  ;;  %v601_v36 = vmul.f32 1.442695, %v599_v58  ;;  %vm425_vm6 = vmor %vm1518_vm0, %vm1534_vm3 }
  0x76   :  { %v603_v51 = vmul.f32 1.442695, %v600_v9  ;;  %v1557_v37 = vld [vmem:[%s1665_s1 + $0x48] sm:$0xff]  ;;  %vm426_vm13 = vmor %vm1527_vm2, %vm1541_vm5  ;;  %v473_v2 = vmax.f32 %v1739_v32, 0.0  ;;  %v830_v41 = vmov 1.0   ;;  %v453_v47 = vmax.f32 %v1740_v5, 0.0 }
  0x77   :  { %783 = vpow2.f32 %v571_v21  ;;  %v427_v48 = vsel %vm425_vm6, 0.0, %v830_v41  ;;  %v455_v62 = vmul.f32 %v1740_v5, %v1557_v37  ;;  %v475_v24 = vmul.f32 %v471_v22, %v1739_v32 }
  0x78   :  { %785 = vpow2.f32 %v573_v55  ;;  %v428_v18 = vsel %vm426_vm13, 0.0, %v830_v41  ;;  %v435_v49 = vmul.f32 %v708_v54, %v427_v48  ;;  %v474_v19 = vmax.f32 %v1741_v38, 0.0  ;;  %v712_v54 = vld [vmem:[%s1665_s1 + $0x60] sm:$0xff] }
  0x79   :  { %787 = vpow2.f32 %v601_v36  ;;  %v476_v7 = vmul.f32 %v472_v56, %v1741_v38  ;;  %v492_v45 = vmax.f32 %v1742_v46, 0.0  ;;  %v436_v44 = vmul.f32 %v709_v3, %v428_v18  ;;  %v1744_v56 = vld [vmem:[#allocation12_spill] sm:$0xff] }
  0x7a   :  { %789 = vpow2.f32 %v603_v51  ;;  %v456_v61 = vsub.f32 %v452_v25, %v454_v16  ;;  %v457_v13 = vsub.f32 %v453_v47, %v455_v62  ;;  %v477_v11 = vsub.f32 %v473_v2, %v475_v24  ;;  %v713_v62 = vld [vmem:[%s1665_s1 + $0x68] sm:$0xff]  ;;  %v724_v3 = vld [vmem:[%s1665_s1 + $0x80] sm:$0xff] }
  0x7b   :  { %v493_v30 = vmax.f32 %v1743_v17, 0.0  ;;  %v494_v29 = vmul.f32 %v714_v52, %v1742_v46  ;;  %v495_v40 = vmul.f32 %v715_v0, %v1743_v17  ;;  %v480_v10 = vmul.f32 0.6931472, %v768_v1  ;;  %v718_v1 = vld [vmem:[%s1665_s1 + $0x20] sm:$0xff]  ;;  %v720_v0 = vld [vmem:[%s1665_s1 + $0x30] sm:$0xff] }
  0x7c   :  { %v437_v28 = vadd.f32 %v1548_v27, %v435_v49  ;;  %v478_v31 = vsub.f32 %v474_v19, %v476_v7  ;;  %v482_v34 = vmul.f32 0.6931472, %v770_v43  ;;  %v438_v21 = vadd.f32 %v1557_v37, %v436_v44  ;;  %v719_v43 = vld [vmem:[%s1665_s1 + $0x28] sm:$0xff]  ;;  %v728_v7 = vld [vmem:[%s1665_s1 + $0x90] sm:$0xff] }
  0x7d   :  { %v772_v14 = vpop.eup %771  ;;  %v496_v58 = vsub.f32 %v492_v45, %v494_v29  ;;  %v497_v4 = vsub.f32 %v493_v30, %v495_v40  ;;  %v483_v25 = vadd.f32 %v480_v10, %v477_v11  ;;  %v514_v24 = vsub.f32 %v1744_v56, %v718_v1  ;;  %v803_v17 = vld [vmem:[%s1664_s0 + $0x30] sm:$0xff]  ;;  %v804_v29 = vld [vmem:[%s1664_s0 + $0x38] sm:$0xff] }
  0x7e   :  { %v774_v53 = vpop.eup %773  ;;  %v553_v23 = vadd.f32 1.0, %v772_v14  ;;  %v439_v2 = vmul.f32 0.5, %v437_v28  ;;  %v484_v14 = vadd.f32 %v482_v34, %v478_v31  ;;  %v440_v48 = vmul.f32 0.5, %v438_v21  ;;  %v733_v34 = vld [vmem:[%s1665_s1 + $0xa8] sm:$0xff] }
  0x7f   :  { %v776_v39 = vpop.eup %775  ;;  %v554_v15 = vadd.f32 1.0, %v774_v53  ;;  %v1745_v53 = vld [vmem:[#allocation13_spill] sm:$0xff]  ;;  %v516_v46 = vmul.f32 %v514_v24, %v514_v24  ;;  %v547_v44 = vmax.f32 %v1056_v60, 0.0  ;;  %v525_v30 = vsub.f32 %v803_v17, %v720_v0 }
  0x80   :  { %v778_v59 = vpop.eup %777  ;;  %791 = vlog2.f32 %v553_v23  ;;  %v461_v6 = vmul.f32 0.6931472, %v776_v39  ;;  %v515_v18 = vsub.f32 %v1745_v53, %v719_v43  ;;  %v485_v39 = vmul.f32 %v712_v54, %v483_v25 }
  0x81   :  { %v780_v35 = vpop.eup %779  ;;  %v463_v63 = vmul.f32 0.6931472, %v778_v59  ;;  %793 = vlog2.f32 %v554_v15  ;;  %v721_v15 = vld [vmem:[%s1665_s1 + $0x38] sm:$0xff]  ;;  %v725_v59 = vld [vmem:[%s1665_s1 + $0x88] sm:$0xff]  ;;  %v486_v38 = vmul.f32 %v713_v62, %v484_v14  ;;  %v575_v28 = vmax.f32 %v1477_v12, 0.0 }
  0x82   :  { %v782_v26 = vpop.eup %781  ;;  %v499_v9 = vmul.f32 0.6931472, %v780_v35  ;;  %v464_v51 = vadd.f32 %v461_v6, %v456_v61  ;;  %v517_v45 = vmul.f32 %v515_v18, %v515_v18  ;;  %v549_v61 = vmul.f32 %v724_v3, %v1056_v60  ;;  %v732_v60 = vld [vmem:[%s1665_s1 + $0xa0] sm:$0xff] }
  0x83   :  { %v465_v22 = vadd.f32 %v463_v63, %v457_v13  ;;  %v501_v5 = vmul.f32 0.6931472, %v782_v26  ;;  %v729_v13 = vld [vmem:[%s1665_s1 + $0x98] sm:$0xff]  ;;  %v526_v40 = vsub.f32 %v804_v29, %v721_v15  ;;  %v548_v35 = vmax.f32 %v1121_v42, 0.0 }
  0x84   :  { %v784_v50 = vpop.eup %783  ;;  %v466_v23 = vmul.f32 %v464_v51, %v439_v2  ;;  %v502_v52 = vadd.f32 %v499_v9, %v496_v58  ;;  %v550_v6 = vmul.f32 %v725_v59, %v1121_v42  ;;  %v577_v31 = vmul.f32 %v728_v7, %v1477_v12  ;;  %v716_v42 = vld [vmem:[%s1665_s1 + $0x70] sm:$0xff] }
  0x85   :  { %v786_v55 = vpop.eup %785  ;;  %v581_v57 = vadd.f32 1.0, %v784_v50  ;;  %v467_v49 = vmul.f32 %v465_v22, %v440_v48  ;;  %v503_v19 = vadd.f32 %v501_v5, %v497_v4  ;;  %v578_v58 = vmul.f32 %v729_v13, %v1482_v20  ;;  %v717_v4 = vld [vmem:[%s1665_s1 + $0x78] sm:$0xff] }
  0x86   :  { %v788_v36 = vpop.eup %787  ;;  %v582_v16 = vadd.f32 1.0, %v786_v55  ;;  %v487_v10 = vadd.f32 %v485_v39, %v466_v23  ;;  %v504_v26 = vmul.f32 %v712_v54, %v502_v52  ;;  %v576_v55 = vmax.f32 %v1482_v20, 0.0 }
  0x87   :  { %v790_v32 = vpop.eup %789  ;;  %795 = vlog2.f32 %v581_v57  ;;  %v611_v41 = vadd.f32 1.0, %v788_v36  ;;  %v488_v50 = vadd.f32 %v486_v38, %v467_v49  ;;  %v505_v21 = vmul.f32 %v713_v62, %v503_v19 }
  0x88   :  { %797 = vlog2.f32 %v582_v16  ;;  %v612_v47 = vadd.f32 1.0, %v790_v32  ;;  %v551_v9 = vsub.f32 %v547_v44, %v549_v61  ;;  %v605_v57 = vmax.f32 %v1492_v33, 0.0 }
  0x89   :  { %799 = vlog2.f32 %v611_v41  ;;  %v607_v36 = vmul.f32 %v732_v60, %v1492_v33  ;;  %v552_v51 = vsub.f32 %v548_v35, %v550_v6  ;;  %v606_v25 = vmax.f32 %v1502_v8, 0.0 }
  0x8a   :  { %801 = vlog2.f32 %v612_v47  ;;  %v608_v1 = vmul.f32 %v733_v34, %v1502_v8  ;;  %v506_v43 = vadd.f32 %v504_v26, %v487_v10  ;;  %v518_v16 = vmul.f32 %v716_v42, %v516_v46 }
  0x8b   :  { %v527_v32 = vmul.f32 %v525_v30, %v525_v30  ;;  %v579_v20 = vsub.f32 %v575_v28, %v577_v31  ;;  %v507_v14 = vadd.f32 %v505_v21, %v488_v50  ;;  %v519_v41 = vmul.f32 %v717_v4, %v517_v45 }
  0x8c   :  { %v528_v48 = vmul.f32 %v526_v40, %v526_v40  ;;  %v580_v54 = vsub.f32 %v576_v55, %v578_v58  ;;  %v609_v56 = vsub.f32 %v605_v57, %v607_v36  ;;  %v610_v18 = vsub.f32 %v606_v25, %v608_v1 }
  0x8d   :  { %v792_v11 = vpop.eup %791  ;;  %v520_v23 = vadd.f32 %v518_v16, %v506_v43  ;;  %v529_v8 = vmul.f32 %v716_v42, %v527_v32  ;;  %v521_v0 = vadd.f32 %v519_v41, %v507_v14  ;;  %v621_v7 = vmul.f32 0.5, %v1548_v27 }
  0x8e   :  { %v794_v63 = vpop.eup %793  ;;  %v556_v12 = vmul.f32 0.6931472, %v792_v11  ;;  %v530_v15 = vmul.f32 %v717_v4, %v528_v48  ;;  %v622_v44 = vmul.f32 0.5, %v1557_v37 }
  0x8f   :  { %v558_v22 = vmul.f32 0.6931472, %v794_v63  ;;  %v531_v61 = vadd.f32 %v529_v8, %v520_v23 }
  0x90   :  { %v559_v47 = vadd.f32 %v556_v12, %v551_v9  ;;  %v532_v11 = vadd.f32 %v530_v15, %v521_v0 }
  0x91   :  { %v560_v24 = vadd.f32 %v558_v22, %v552_v51 }
  0x94   :  { %v796_v2 = vpop.eup %795 }
  0x95   :  { %v798_v5 = vpop.eup %797  ;;  %v584_v62 = vmul.f32 0.6931472, %v796_v2 }
  0x96   :  { %v800_v33 = vpop.eup %799  ;;  %v586_v53 = vmul.f32 0.6931472, %v798_v5 }
  0x97   :  { %v802_v3 = vpop.eup %801  ;;  %v587_v39 = vadd.f32 %v584_v62, %v579_v20  ;;  %v614_v52 = vmul.f32 0.6931472, %v800_v33 }
  0x98   :  { %v588_v59 = vadd.f32 %v586_v53, %v580_v54  ;;  %v616_v49 = vmul.f32 0.6931472, %v802_v3 }
  0x99   :  { %v589_v38 = vadd.f32 %v587_v39, %v559_v47  ;;  %v617_v19 = vadd.f32 %v614_v52, %v609_v56 }
  0x9a   :  { %v590_v46 = vadd.f32 %v588_v59, %v560_v24  ;;  %v618_v45 = vadd.f32 %v616_v49, %v610_v18 }
  0x9b   :  { %v619_v13 = vadd.f32 %v617_v19, %v589_v38 }
  0x9c   :  { %v620_v17 = vadd.f32 %v618_v45, %v590_v46 }
  0x9d   :  { %v623_v30 = vmul.f32 %v621_v7, %v619_v13 }
  0x9e   :  { %v624_v29 = vmul.f32 %v622_v44, %v620_v17 }
  0x9f   :  { %v625_v40 = vadd.f32 %v623_v30, %v531_v61 }
  0xa0   :  { %v626_v35 = vadd.f32 %v624_v29, %v532_v11 }
  0xa2   :  { %v627_v6 = vadd.f32 %v626_v35, %v625_v40 }
  0xa4   :  { %628 = vadd.xlane.f32.xlu0 %v627_v6 }
 0x12d   :  { %v629_v60 = vpop.xlane.xlu0 %628 }
 0x12e   :  { %v630_v63 = vrot.slane %v629_v60, 4 }
 0x130   :  { %v631_v10 = vadd.f32 %v630_v63, %v629_v60 }
 0x132   :  { %v632_v26 = vrot.slane %v631_v10, 2 }
 0x134   :  { %v633_v28 = vadd.f32 %v632_v26, %v631_v10 }
 0x136   :  { %v634_v27 = vrot.slane %v633_v28, 1 }
 0x138   :  { %v635_v31 = vadd.f32 %v634_v27, %v633_v28 }
 0x13a   :  { %734 = vpush %v635_v31 }
 0x16b   :  { %s735_s1 = spop %734 }
 0x16c   :  { %638 = sst [smem:[#allocation5]] %s735_s1 }
 0x16d   :  { %646 = dma.smem_to_hbm %s831_s13, 16, %s1667_s3, [#allocation3]  }
 0x16e   :  { %827 = dma.done.wait [#allocation3], 16  }
 0x16f   :  { %828 = vsyncadd [#allocation3], 4294967280 }
 0x170   :  { %650 = sfence }
 0x171   :  { %651 = vsyncpa [#allocation3], 1 }
 0x172   :  { %652 = vsyncpa [#allocation4], 1 }

</bundles_post_ra>
